<compile_context>
chip_gen: v5e
topology: v5e:2x2
jax: 0.10.0
libtpu: 0.0.40
codegen_flags: <defaults>
</compile_context>

<pallas_src>
import functools

import jax
import jax.numpy as jnp
from jax import lax
from jax.experimental import pallas as pl
from jax.experimental.pallas import tpu as pltpu


_VMEM_LIMIT_BYTES = 48 * 1024 * 1024  # safe headroom on v7x (64 MiB physical VMEM)


def _params(dims):
    return pltpu.CompilerParams(
        dimension_semantics=dims,
        vmem_limit_bytes=_VMEM_LIMIT_BYTES,
    )


def _choose_block(n, preferred, granule):
    """Largest b <= preferred with n % b == 0 and b % granule == 0, else n (full dim)."""
    if n <= preferred:
        return n
    b = (preferred // granule) * granule
    while b >= granule:
        if n % b == 0:
            return b
        b -= granule
    return n


# ---------------------------------------------------------------------------
# Kernels
# ---------------------------------------------------------------------------

def _xw1_kernel(x_ref, w1_ref, s1_ref):
    # support1 panel = x_panel @ W1   (bf16 in, f32 acc, bf16 out)
    s1 = jnp.dot(x_ref[...], w1_ref[...], preferred_element_type=jnp.float32)
    s1_ref[...] = s1.astype(s1_ref.dtype)


def _gc1_kernel(adj_ref, s1_ref, w23_ref, s23_ref):
    # h1 panel = relu(adj_panel @ support1); then a single fused feature transform
    # for gc2/gc3: s23 = h1 @ [W2 | W3]  (so h1 never hits HBM and the two small
    # matmuls share one MXU pass).
    h1 = jnp.maximum(
        jnp.dot(adj_ref[...], s1_ref[...], preferred_element_type=jnp.float32), 0.0
    )
    s23_ref[...] = jnp.dot(
        h1.astype(jnp.bfloat16), w23_ref[...], preferred_element_type=jnp.float32
    ).astype(s23_ref.dtype)


def _gc23_kernel(adj_ref, s23_ref, eps_ref, mu_ref, logvar_ref, z_ref, *, hidden2):
    # [mu | logvar]_panel = adj_panel @ s23 in ONE MXU matmul, then split lanes;
    # z_panel = mu + eps * exp(logvar)   (reparameterize; std = exp(logvar)).
    ml = jnp.dot(adj_ref[...], s23_ref[...], preferred_element_type=jnp.float32)
    mu = ml[:, :hidden2]
    logvar = ml[:, hidden2:]
    mu_ref[...] = mu
    logvar_ref[...] = logvar
    z_ref[...] = (mu + eps_ref[...] * jnp.exp(logvar)).astype(z_ref.dtype)


def _decoder_kernel(zr_ref, zc_ref, pred_ref):
    # pred tile = z_rows @ z_cols^T via dot_general contracting dim 1 against
    # dim 1 (no explicit transpose of z inside the kernel).
    pred = lax.dot_general(
        zr_ref[...], zc_ref[...],
        dimension_numbers=(((1,), (1,)), ((), ())),
        preferred_element_type=jnp.float32,
    )
    pred_ref[...] = pred.astype(pred_ref.dtype)


# ---------------------------------------------------------------------------
# Forward wrapper
# ---------------------------------------------------------------------------

def gcn_model_vae_forward(x, adj, w1, w2, w3, eps, *, row_block=256, pred_block=512):
    """Returns (pred_adj_logits, mu, logvar), matching GCNModelVAE.forward."""
    n_nodes, feat_dim = x.shape
    hidden1 = w1.shape[1]
    hidden2 = w2.shape[1]
    assert adj.shape == (n_nodes, n_nodes)
    assert w2.shape == (hidden1, hidden2) and w3.shape == (hidden1, hidden2)
    assert eps.shape == (n_nodes, hidden2)

    bf16, f32 = jnp.bfloat16, jnp.float32

    # bf16 MXU inputs (f32 accumulation): full-rate MXU and half the adj/x DMA.
    x_bf = x.astype(bf16)
    adj_bf = adj.astype(bf16)
    w1_bf = w1.astype(bf16)
    # Fuse gc2/gc3 weights so their projections share one MXU matmul.
    w23_bf = jnp.concatenate([w2.astype(bf16), w3.astype(bf16)], axis=1)

    tm = _choose_block(n_nodes, row_block, 8)       # encoder row-panel height
    tmd = _choose_block(n_nodes, pred_block, 8)     # decoder row tile
    tnd = _choose_block(n_nodes, pred_block, 128)   # decoder col (lane) tile

    # ---- Stage 0: support1 = x @ W1  -> [N, H1], bf16 intermediate -----------
    s1 = pl.pallas_call(
        _xw1_kernel,
        grid=(n_nodes // tm,),
        out_shape=jax.ShapeDtypeStruct((n_nodes, hidden1), bf16),
        in_specs=[
            pl.BlockSpec((tm, feat_dim), lambda i: (i, 0)),
            pl.BlockSpec((feat_dim, hidden1), lambda i: (0, 0)),
        ],
        out_specs=pl.BlockSpec((tm, hidden1), lambda i: (i, 0)),
        compiler_params=_params(("parallel",)),
    )(x_bf, w1_bf)

    # ---- Stage 1: h1 = relu(adj @ s1); s23 = h1 @ [W2 | W3] ------------------
    s23 = pl.pallas_call(
        _gc1_kernel,
        grid=(n_nodes // tm,),
        out_shape=jax.ShapeDtypeStruct((n_nodes, 2 * hidden2), bf16),
        in_specs=[
            pl.BlockSpec((tm, n_nodes), lambda i: (i, 0)),            # adj row panel
            pl.BlockSpec((n_nodes, hidden1), lambda i: (0, 0)),       # support1 (resident)
            pl.BlockSpec((hidden1, 2 * hidden2), lambda i: (0, 0)),   # [W2 | W3]
        ],
        out_specs=pl.BlockSpec((tm, 2 * hidden2), lambda i: (i, 0)),
        compiler_params=_params(("parallel",)),
    )(adj_bf, s1, w23_bf)

    # ---- Stage 2: [mu|logvar] = adj @ s23; z = mu + eps*exp(logvar) ----------
    mu, logvar, z_bf = pl.pallas_call(
        functools.partial(_gc23_kernel, hidden2=hidden2),
        grid=(n_nodes // tm,),
        out_shape=(
            jax.ShapeDtypeStruct((n_nodes, hidden2), f32),   # mu
            jax.ShapeDtypeStruct((n_nodes, hidden2), f32),   # logvar
            jax.ShapeDtypeStruct((n_nodes, hidden2), bf16),  # z (decoder input)
        ),
        in_specs=[
            pl.BlockSpec((tm, n_nodes), lambda i: (i, 0)),             # adj row panel
            pl.BlockSpec((n_nodes, 2 * hidden2), lambda i: (0, 0)),    # s23 (resident)
            pl.BlockSpec((tm, hidden2), lambda i: (i, 0)),             # eps row panel
        ],
        out_specs=(
            pl.BlockSpec((tm, hidden2), lambda i: (i, 0)),
            pl.BlockSpec((tm, hidden2), lambda i: (i, 0)),
            pl.BlockSpec((tm, hidden2), lambda i: (i, 0)),
        ),
        compiler_params=_params(("parallel",)),
    )(adj_bf, s23, eps)

    # ---- Stage 3 (decoder): pred = z @ z.T, lane-dense (TM, TN) tiles --------
    # Full matrix is emitted (symmetric) to match PyTorch dc(z) semantics.
    pred = pl.pallas_call(
        _decoder_kernel,
        grid=(n_nodes // tmd, n_nodes // tnd),
        out_shape=jax.ShapeDtypeStruct((n_nodes, n_nodes), f32),
        in_specs=[
            pl.BlockSpec((tmd, hidden2), lambda i, j: (i, 0)),   # z row panel
            pl.BlockSpec((tnd, hidden2), lambda i, j: (j, 0)),   # z col panel
        ],
        out_specs=pl.BlockSpec((tmd, tnd), lambda i, j: (i, j)),
        compiler_params=_params(("parallel", "parallel")),
    )(z_bf, z_bf)

    # Matches PyTorch: return (self.dc(z_u), mu, logvar)
    return pred, mu, logvar


def _glorot(key, shape):
    fan_in, fan_out = shape
    limit = jnp.sqrt(6.0 / (fan_in + fan_out))
    return jax.random.uniform(key, shape, jnp.float32, -limit, limit)


if __name__ == "__main__":
    # Small shapes consistent with the module: n_nodes=512, input_feat_dim=32,
    # hidden_dim1=32, hidden_dim2=16. Smaller-than-default blocks are passed so
    # the demo exercises the tiled grids (encoder grid=4, decoder grid=2x2).
    n_nodes, input_feat_dim, hidden_dim1, hidden_dim2 = 512, 32, 32, 16

    key = jax.random.PRNGKey(0)
    k_x, k_adj, k_w1, k_w2, k_w3, k_eps = jax.random.split(key, 6)

    x = jax.random.normal(k_x, (n_nodes, input_feat_dim), jnp.float32)

    # Symmetric, row-normalized dense adjacency (stand-in for the sparse
    # normalized adjacency the PyTorch model consumes).
    a = jax.random.uniform(k_adj, (n_nodes, n_nodes), jnp.float32)
    a = (a + a.T) * 0.5
    adj = a / jnp.sum(a, axis=1, keepdims=True)

    w1 = _glorot(k_w1, (input_feat_dim, hidden_dim1))
    w2 = _glorot(k_w2, (hidden_dim1, hidden_dim2))
    w3 = _glorot(k_w3, (hidden_dim1, hidden_dim2))
    eps = jax.random.normal(k_eps, (n_nodes, hidden_dim2), jnp.float32)

    fwd = jax.jit(
        lambda x_, adj_, w1_, w2_, w3_, eps_: gcn_model_vae_forward(
            x_, adj_, w1_, w2_, w3_, eps_, row_block=128, pred_block=256
        )
    )
    pred, mu, logvar = fwd(x, adj, w1, w2, w3, eps)
    jax.block_until_ready((pred, mu, logvar))

    # Pure-JAX reference with the same bf16-input / f32-accumulate pipeline.
    bf, f32 = jnp.bfloat16, jnp.float32
    adj_bf, x_bf = adj.astype(bf), x.astype(bf)
    w1_bf, w2_bf, w3_bf = w1.astype(bf), w2.astype(bf), w3.astype(bf)
    s1_r = jnp.dot(x_bf, w1_bf, preferred_element_type=f32).astype(bf)
    h1_r = jnp.maximum(jnp.dot(adj_bf, s1_r, preferred_element_type=f32), 0.0).astype(bf)
    s2_r = jnp.dot(h1_r, w2_bf, preferred_element_type=f32).astype(bf)
    s3_r = jnp.dot(h1_r, w3_bf, preferred_element_type=f32).astype(bf)
    mu_r = jnp.dot(adj_bf, s2_r, preferred_element_type=f32)
    logvar_r = jnp.dot(adj_bf, s3_r, preferred_element_type=f32)
    z_r = (mu_r + eps * jnp.exp(logvar_r)).astype(bf)
    pred_r = lax.dot_general(
        z_r, z_r, dimension_numbers=(((1,), (1,)), ((), ())),
        preferred_element_type=f32,
    )

    assert pred.shape == (n_nodes, n_nodes)
    assert mu.shape == (n_nodes, hidden_dim2) and logvar.shape == (n_nodes, hidden_dim2)
    assert jnp.allclose(mu, mu_r, atol=2e-2, rtol=2e-2)
    assert jnp.allclose(logvar, logvar_r, atol=2e-2, rtol=2e-2)
    assert jnp.allclose(pred, pred_r, atol=5e-2, rtol=5e-2)

    print("KERNEL_OK")
</pallas_src>

<mosaic_0001>
module attributes {stable_mosaic.version = 11 : i64} {
  func.func @_gc1_kernel(%arg0: i32, %arg1: memref<128x512xbf16, #tpu.memory_space<vmem>>, %arg2: memref<512x32xbf16, #tpu.memory_space<vmem>>, %arg3: memref<32x32xbf16, #tpu.memory_space<vmem>>, %arg4: memref<128x32xbf16, #tpu.memory_space<vmem>>) attributes {dimension_semantics = [#tpu.dimension_semantics<parallel>], iteration_bounds = array<i64: 4>, scalar_prefetch = 0 : i64, scratch_operands = 0 : i64, tpu.core_type = #tpu.core_type<tc>, window_params = [{transform_indices = @transform_0, window_bounds = array<i64: 128, 512>}, {pipeline_mode = #tpu.pipeline_mode<synchronous>, transform_indices = @transform_1, window_bounds = array<i64: 512, 32>}, {pipeline_mode = #tpu.pipeline_mode<synchronous>, transform_indices = @transform_2, window_bounds = array<i64: 32, 32>}, {transform_indices = @transform_3, window_bounds = array<i64: 128, 32>}]} {
    %c0 = arith.constant 0 : index
    %c0_0 = arith.constant 0 : index
    %0 = vector.load %arg1[%c0, %c0_0] : memref<128x512xbf16, #tpu.memory_space<vmem>>, vector<128x512xbf16>
    %c0_1 = arith.constant 0 : index
    %c0_2 = arith.constant 0 : index
    %1 = vector.load %arg2[%c0_1, %c0_2] : memref<512x32xbf16, #tpu.memory_space<vmem>>, vector<512x32xbf16>
    %cst = arith.constant dense<0.000000e+00> : vector<128x32xf32>
    %2 = tpu.matmul %0, %1, %cst {dimension_numbers = #tpu.dot_dimension_numbers<[1], [0], [0], [1], [0, 0, 1, 1], [], []>} : vector<128x512xbf16>, vector<512x32xbf16>, vector<128x32xf32> -> vector<128x32xf32>
    %cst_3 = arith.constant 0.000000e+00 : f32
    %3 = vector.broadcast %cst_3 : f32 to vector<128x32xf32>
    %4 = arith.maximumf %2, %3 : vector<128x32xf32>
    %5 = arith.truncf %4 : vector<128x32xf32> to vector<128x32xbf16>
    %c0_4 = arith.constant 0 : index
    %c0_5 = arith.constant 0 : index
    %6 = vector.load %arg3[%c0_4, %c0_5] : memref<32x32xbf16, #tpu.memory_space<vmem>>, vector<32x32xbf16>
    %cst_6 = arith.constant dense<0.000000e+00> : vector<128x32xf32>
    %7 = tpu.matmul %5, %6, %cst_6 {dimension_numbers = #tpu.dot_dimension_numbers<[1], [0], [0], [1], [0, 0, 1, 1], [], []>} : vector<128x32xbf16>, vector<32x32xbf16>, vector<128x32xf32> -> vector<128x32xf32>
    %8 = arith.truncf %7 : vector<128x32xf32> to vector<128x32xbf16>
    %c0_7 = arith.constant 0 : index
    %c0_8 = arith.constant 0 : index
    %9 = vector.load %arg4[%c0_7, %c0_8] : memref<128x32xbf16, #tpu.memory_space<vmem>>, vector<128x32xbf16>
    tpu.vector_store %arg4[%c0_7, %c0_8], %8 {strides = array<i32>} : memref<128x32xbf16, #tpu.memory_space<vmem>>, vector<128x32xbf16>,
    return
  }
  func.func @transform_0(%arg0: i32) -> (i32, i32) {
    %c0_i32 = arith.constant 0 : i32
    %c0_i32_0 = arith.constant 0 : i32
    return %arg0, %c0_i32 : i32, i32
  }
  func.func @transform_1(%arg0: i32) -> (i32, i32) {
    %c0_i32 = arith.constant 0 : i32
    %c0_i32_0 = arith.constant 0 : i32
    %c0_i32_1 = arith.constant 0 : i32
    return %c0_i32, %c0_i32_0 : i32, i32
  }
  func.func @transform_2(%arg0: i32) -> (i32, i32) {
    %c0_i32 = arith.constant 0 : i32
    %c0_i32_0 = arith.constant 0 : i32
    %c0_i32_1 = arith.constant 0 : i32
    return %c0_i32, %c0_i32_0 : i32, i32
  }
  func.func @transform_3(%arg0: i32) -> (i32, i32) {
    %c0_i32 = arith.constant 0 : i32
    %c0_i32_0 = arith.constant 0 : i32
    return %arg0, %c0_i32 : i32, i32
  }
}

module attributes {stable_mosaic.version = 11 : i64} {
  func.func @_xw1_kernel(%arg0: i32, %arg1: memref<128x32xbf16, #tpu.memory_space<vmem>>, %arg2: memref<32x32xbf16, #tpu.memory_space<vmem>>, %arg3: memref<128x32xbf16, #tpu.memory_space<vmem>>) attributes {dimension_semantics = [#tpu.dimension_semantics<parallel>], iteration_bounds = array<i64: 4>, scalar_prefetch = 0 : i64, scratch_operands = 0 : i64, tpu.core_type = #tpu.core_type<tc>, window_params = [{transform_indices = @transform_0, window_bounds = array<i64: 128, 32>}, {pipeline_mode = #tpu.pipeline_mode<synchronous>, transform_indices = @transform_1, window_bounds = array<i64: 32, 32>}, {transform_indices = @transform_2, window_bounds = array<i64: 128, 32>}]} {
    %c0 = arith.constant 0 : index
    %c0_0 = arith.constant 0 : index
    %0 = vector.load %arg1[%c0, %c0_0] : memref<128x32xbf16, #tpu.memory_space<vmem>>, vector<128x32xbf16>
    %c0_1 = arith.constant 0 : index
    %c0_2 = arith.constant 0 : index
    %1 = vector.load %arg2[%c0_1, %c0_2] : memref<32x32xbf16, #tpu.memory_space<vmem>>, vector<32x32xbf16>
    %cst = arith.constant dense<0.000000e+00> : vector<128x32xf32>
    %2 = tpu.matmul %0, %1, %cst {dimension_numbers = #tpu.dot_dimension_numbers<[1], [0], [0], [1], [0, 0, 1, 1], [], []>} : vector<128x32xbf16>, vector<32x32xbf16>, vector<128x32xf32> -> vector<128x32xf32>
    %3 = arith.truncf %2 : vector<128x32xf32> to vector<128x32xbf16>
    %c0_3 = arith.constant 0 : index
    %c0_4 = arith.constant 0 : index
    %4 = vector.load %arg3[%c0_3, %c0_4] : memref<128x32xbf16, #tpu.memory_space<vmem>>, vector<128x32xbf16>
    tpu.vector_store %arg3[%c0_3, %c0_4], %3 {strides = array<i32>} : memref<128x32xbf16, #tpu.memory_space<vmem>>, vector<128x32xbf16>,
    return
  }
  func.func @transform_0(%arg0: i32) -> (i32, i32) {
    %c0_i32 = arith.constant 0 : i32
    %c0_i32_0 = arith.constant 0 : i32
    return %arg0, %c0_i32 : i32, i32
  }
  func.func @transform_1(%arg0: i32) -> (i32, i32) {
    %c0_i32 = arith.constant 0 : i32
    %c0_i32_0 = arith.constant 0 : i32
    %c0_i32_1 = arith.constant 0 : i32
    return %c0_i32, %c0_i32_0 : i32, i32
  }
  func.func @transform_2(%arg0: i32) -> (i32, i32) {
    %c0_i32 = arith.constant 0 : i32
    %c0_i32_0 = arith.constant 0 : i32
    return %arg0, %c0_i32 : i32, i32
  }
}

module attributes {stable_mosaic.version = 11 : i64} {
  func.func @_gc23_kernel(%arg0: i32, %arg1: memref<128x512xbf16, #tpu.memory_space<vmem>>, %arg2: memref<512x32xbf16, #tpu.memory_space<vmem>>, %arg3: memref<128x16xf32, #tpu.memory_space<vmem>>, %arg4: memref<128x16xf32, #tpu.memory_space<vmem>>, %arg5: memref<128x16xf32, #tpu.memory_space<vmem>>, %arg6: memref<128x16xbf16, #tpu.memory_space<vmem>>) attributes {dimension_semantics = [#tpu.dimension_semantics<parallel>], iteration_bounds = array<i64: 4>, scalar_prefetch = 0 : i64, scratch_operands = 0 : i64, tpu.core_type = #tpu.core_type<tc>, window_params = [{transform_indices = @transform_0, window_bounds = array<i64: 128, 512>}, {pipeline_mode = #tpu.pipeline_mode<synchronous>, transform_indices = @transform_1, window_bounds = array<i64: 512, 32>}, {transform_indices = @transform_2, window_bounds = array<i64: 128, 16>}, {transform_indices = @transform_3, window_bounds = array<i64: 128, 16>}, {transform_indices = @transform_4, window_bounds = array<i64: 128, 16>}, {transform_indices = @transform_5, window_bounds = array<i64: 128, 16>}]} {
    %c0 = arith.constant 0 : index
    %c0_0 = arith.constant 0 : index
    %0 = vector.load %arg1[%c0, %c0_0] : memref<128x512xbf16, #tpu.memory_space<vmem>>, vector<128x512xbf16>
    %c0_1 = arith.constant 0 : index
    %c0_2 = arith.constant 0 : index
    %1 = vector.load %arg2[%c0_1, %c0_2] : memref<512x32xbf16, #tpu.memory_space<vmem>>, vector<512x32xbf16>
    %cst = arith.constant dense<0.000000e+00> : vector<128x32xf32>
    %2 = tpu.matmul %0, %1, %cst {dimension_numbers = #tpu.dot_dimension_numbers<[1], [0], [0], [1], [0, 0, 1, 1], [], []>} : vector<128x512xbf16>, vector<512x32xbf16>, vector<128x32xf32> -> vector<128x32xf32>
    %3 = vector.extract_strided_slice %2 {offsets = [0, 0], sizes = [128, 16], strides = [1, 1]} : vector<128x32xf32> to vector<128x16xf32>
    %4 = vector.extract_strided_slice %2 {offsets = [0, 16], sizes = [128, 16], strides = [1, 1]} : vector<128x32xf32> to vector<128x16xf32>
    %c0_3 = arith.constant 0 : index
    %c0_4 = arith.constant 0 : index
    %5 = vector.load %arg4[%c0_3, %c0_4] : memref<128x16xf32, #tpu.memory_space<vmem>>, vector<128x16xf32>
    tpu.vector_store %arg4[%c0_3, %c0_4], %3 {strides = array<i32>} : memref<128x16xf32, #tpu.memory_space<vmem>>, vector<128x16xf32>,
    %c0_5 = arith.constant 0 : index
    %c0_6 = arith.constant 0 : index
    %6 = vector.load %arg5[%c0_5, %c0_6] : memref<128x16xf32, #tpu.memory_space<vmem>>, vector<128x16xf32>
    tpu.vector_store %arg5[%c0_5, %c0_6], %4 {strides = array<i32>} : memref<128x16xf32, #tpu.memory_space<vmem>>, vector<128x16xf32>,
    %c0_7 = arith.constant 0 : index
    %c0_8 = arith.constant 0 : index
    %7 = vector.load %arg3[%c0_7, %c0_8] : memref<128x16xf32, #tpu.memory_space<vmem>>, vector<128x16xf32>
    %8 = math.exp %4 : vector<128x16xf32>
    %9 = arith.mulf %7, %8 : vector<128x16xf32>
    %10 = arith.addf %3, %9 : vector<128x16xf32>
    %11 = arith.truncf %10 : vector<128x16xf32> to vector<128x16xbf16>
    %c0_9 = arith.constant 0 : index
    %c0_10 = arith.constant 0 : index
    %12 = vector.load %arg6[%c0_9, %c0_10] : memref<128x16xbf16, #tpu.memory_space<vmem>>, vector<128x16xbf16>
    tpu.vector_store %arg6[%c0_9, %c0_10], %11 {strides = array<i32>} : memref<128x16xbf16, #tpu.memory_space<vmem>>, vector<128x16xbf16>,
    return
  }
  func.func @transform_0(%arg0: i32) -> (i32, i32) {
    %c0_i32 = arith.constant 0 : i32
    %c0_i32_0 = arith.constant 0 : i32
    return %arg0, %c0_i32 : i32, i32
  }
  func.func @transform_1(%arg0: i32) -> (i32, i32) {
    %c0_i32 = arith.constant 0 : i32
    %c0_i32_0 = arith.constant 0 : i32
    %c0_i32_1 = arith.constant 0 : i32
    return %c0_i32, %c0_i32_0 : i32, i32
  }
  func.func @transform_2(%arg0: i32) -> (i32, i32) {
    %c0_i32 = arith.constant 0 : i32
    %c0_i32_0 = arith.constant 0 : i32
    return %arg0, %c0_i32 : i32, i32
  }
  func.func @transform_3(%arg0: i32) -> (i32, i32) {
    %c0_i32 = arith.constant 0 : i32
    %c0_i32_0 = arith.constant 0 : i32
    return %arg0, %c0_i32 : i32, i32
  }
  func.func @transform_4(%arg0: i32) -> (i32, i32) {
    %c0_i32 = arith.constant 0 : i32
    %c0_i32_0 = arith.constant 0 : i32
    return %arg0, %c0_i32 : i32, i32
  }
  func.func @transform_5(%arg0: i32) -> (i32, i32) {
    %c0_i32 = arith.constant 0 : i32
    %c0_i32_0 = arith.constant 0 : i32
    return %arg0, %c0_i32 : i32, i32
  }
}

module attributes {stable_mosaic.version = 11 : i64} {
  func.func @_decoder_kernel(%arg0: i32, %arg1: i32, %arg2: memref<256x16xbf16, #tpu.memory_space<vmem>>, %arg3: memref<256x16xbf16, #tpu.memory_space<vmem>>, %arg4: memref<256x256xf32, #tpu.memory_space<vmem>>) attributes {dimension_semantics = [#tpu.dimension_semantics<parallel>, #tpu.dimension_semantics<parallel>], iteration_bounds = array<i64: 2, 2>, scalar_prefetch = 0 : i64, scratch_operands = 0 : i64, tpu.core_type = #tpu.core_type<tc>, window_params = [{transform_indices = @transform_0, window_bounds = array<i64: 256, 16>}, {transform_indices = @transform_1, window_bounds = array<i64: 256, 16>}, {transform_indices = @transform_2, window_bounds = array<i64: 256, 256>}]} {
    %c0 = arith.constant 0 : index
    %c0_0 = arith.constant 0 : index
    %0 = vector.load %arg2[%c0, %c0_0] : memref<256x16xbf16, #tpu.memory_space<vmem>>, vector<256x16xbf16>
    %c0_1 = arith.constant 0 : index
    %c0_2 = arith.constant 0 : index
    %1 = vector.load %arg3[%c0_1, %c0_2] : memref<256x16xbf16, #tpu.memory_space<vmem>>, vector<256x16xbf16>
    %cst = arith.constant dense<0.000000e+00> : vector<256x256xf32>
    %2 = tpu.matmul %0, %1, %cst {dimension_numbers = #tpu.dot_dimension_numbers<[1], [1], [0], [0], [0, 0, 1, 0], [], []>} : vector<256x16xbf16>, vector<256x16xbf16>, vector<256x256xf32> -> vector<256x256xf32>
    %c0_3 = arith.constant 0 : index
    %c0_4 = arith.constant 0 : index
    %3 = vector.load %arg4[%c0_3, %c0_4] : memref<256x256xf32, #tpu.memory_space<vmem>>, vector<256x256xf32>
    tpu.vector_store %arg4[%c0_3, %c0_4], %2 {strides = array<i32>} : memref<256x256xf32, #tpu.memory_space<vmem>>, vector<256x256xf32>,
    return
  }
  func.func @transform_0(%arg0: i32, %arg1: i32) -> (i32, i32) {
    %c0_i32 = arith.constant 0 : i32
    %c0_i32_0 = arith.constant 0 : i32
    return %arg0, %c0_i32 : i32, i32
  }
  func.func @transform_1(%arg0: i32, %arg1: i32) -> (i32, i32) {
    %c0_i32 = arith.constant 0 : i32
    %c0_i32_0 = arith.constant 0 : i32
    return %arg1, %c0_i32 : i32, i32
  }
  func.func @transform_2(%arg0: i32, %arg1: i32) -> (i32, i32) {
    %c0_i32 = arith.constant 0 : i32
    return %arg0, %arg1 : i32, i32
  }
}

</mosaic_0001>

<bundles_post_ra>
// kernel: _lambda_.4
= control target key start
LH: loop header
LB: loop body
LE: loop exit
PB: predicated region body
PF: predicated region fallthrough
CT: control target
= control target key end

     0   :  { %s489_s9 = smov 0   ;;  %s554_s0 = inlined_call_operand.vmem [shape: bf16[512,32], index: 0, kind: input, shape index: {}]   ;;  %s555_s1 = inlined_call_operand.vmem [shape: bf16[32,32], index: 1, kind: input, shape index: {}]   ;;  %s556_s2 = inlined_call_operand.vmem [shape: bf16[512,32], index: 2, kind: output, shape index: {}]  }
   0x1 LB: > { %s383_s10 = sadd.s32 4294967295, %s472_s9   ;;  %p387_p0 = scmp.ge.s32.totalorder %s472_s9, 1  ;;  %s472_s9 = sphi %s489_s9, %s12_s9  }
   0x2   : > { %p113_p1 = scmp.lt.s32.totalorder %s472_s9, 5 }
   0x4   : > { %p114_p2 = pnand %p387_p0, %p113_p1 }
   0x5   : > { %s388_s13 = sshll.u32 (!%p114_p2), %s383_s10, 4 }
   0x6   : > { %117 = sbr.rel (%p114_p2) target bundleno = 180 (0xb4), region = 28  ;;  %p136_p3 = scmp.lt.s32.totalorder (!%p114_p2), %s388_s13, 63 }
   0xb   : > { %v451_v0 = vld [vmem:[%s555_s1 + $0x8] sm:$0xff]  ;;  %v450_v1 = vld [vmem:[%s555_s1] sm:$0xff]  ;;  %s558_s13 = smov (!%p136_p3, %s388_s13), 63  ;;  %vm220_vm0 = vcmask 261120   ;;  %vm310_vm1 = vcmask 257024  }
   0xc   : > { %251 = vmatpush.bf16.msra.mxu0 %v451_v0  ;;  %452 = vmatpush.bf16.msra.mxu1 %v451_v0  ;;  %s389_s16 = sshll.u32 %s558_s13, 2 }
   0xd   : > { %453 = vmatpush.bf16.msra.mxu2 %v451_v0  ;;  %454 = vmatpush.bf16.msra.mxu3 %v451_v0  ;;  %s139_s19 = scalar_lea.vmem %s554_s0, %s389_s16  ;;  %s517_s22 = scalar_lea.vmem %s556_s2, %s389_s16 }
   0xe   : > { %v442_v2 = vld [vmem:[%s139_s19] sm:$0xff]  ;;  %v444_v3 = vld [vmem:[%s139_s19 + $0x10] sm:$0xff]  ;;  %v443_v6 = vld [vmem:[%s139_s19 + $0x8] sm:$0xff] }
   0xf   : > { %v446_v4 = vld [vmem:[%s139_s19 + $0x20] sm:$0xff]  ;;  %v448_v5 = vld [vmem:[%s139_s19 + $0x30] sm:$0xff]  ;;  %v445_v7 = vld [vmem:[%s139_s19 + $0x18] sm:$0xff] }
  0x10   : > { %252 = vmatpush.bf16.msra.mxu0 %v450_v1  ;;  %455 = vmatpush.bf16.msra.mxu1 %v450_v1  ;;  %v447_v8 = vld [vmem:[%s139_s19 + $0x28] sm:$0xff]  ;;  %v449_v9 = vld [vmem:[%s139_s19 + $0x38] sm:$0xff] }
  0x11   : > { %456 = vmatpush.bf16.msra.mxu2 %v450_v1  ;;  %457 = vmatpush.bf16.msra.mxu3 %v450_v1 }
  0x13   : > { %432 = vmatmul.msk.bf16.vlgmr.msra.gmra.mxu0 %vm220_vm0, %v442_v2  ;;  %434 = vmatmul.msk.bf16.vlgmr.msra.gmra.mxu1 %vm220_vm0, %v444_v3 }
  0x14   : > { %436 = vmatmul.msk.bf16.vlgmr.msra.gmra.mxu2 %vm220_vm0, %v446_v4  ;;  %438 = vmatmul.msk.bf16.vlgmr.msra.gmra.mxu3 %vm220_vm0, %v448_v5 }
  0x23   : > { %433 = vmatmul.msk.bf16.gmra.mxu0 %vm220_vm0, %v443_v6  ;;  %435 = vmatmul.msk.bf16.gmra.mxu1 %vm220_vm0, %v445_v7 }
  0x24   : > { %437 = vmatmul.msk.bf16.gmra.mxu2 %vm220_vm0, %v447_v8  ;;  %439 = vmatmul.msk.bf16.gmra.mxu3 %vm220_vm0, %v449_v9 }
  0x90   : > { %v254_v10 = vpop.f32.mrf.mxu0  ;;  %v264_v11 = vpop.f32.mrf.mxu1 }
  0x91   : > { %v294_v12 = vpack.c.bf16 %v254_v10, %v254_v10  ;;  %v298_v13 = vpack.c.bf16 %v264_v11, %v264_v11 }
  0x93   : > { %311 = vst.msk [vmem:[%s517_s22] sm:$0xf] %vm310_vm1, %v294_v12 }
  0x94   : > { %315 = vst.msk [vmem:[%s517_s22 + $0x10] sm:$0xf] %vm310_vm1, %v298_v13 }
  0x97   : > { %v274_v14 = vpop.f32.mrf.mxu2  ;;  %v284_v15 = vpop.f32.mrf.mxu3 }
  0x98   : > { %v302_v16 = vpack.c.bf16 %v274_v14, %v274_v14  ;;  %v306_v17 = vpack.c.bf16 %v284_v15, %v284_v15  ;;  %v256_v18 = vpop.f32.mrf.mxu0  ;;  %v266_v19 = vpop.f32.mrf.mxu1 }
  0x99   : > { %v295_v20 = vpack.c.bf16 %v256_v18, %v256_v18  ;;  %v299_v21 = vpack.c.bf16 %v266_v19, %v266_v19 }
  0x9a   : > { %319 = vst.msk [vmem:[%s517_s22 + $0x20] sm:$0xf] %vm310_vm1, %v302_v16 }
  0x9b   : > { %323 = vst.msk [vmem:[%s517_s22 + $0x30] sm:$0xf] %vm310_vm1, %v306_v17 }
  0x9c   : > { %312 = vst.msk [vmem:[%s517_s22 + $0x4] sm:$0xf] %vm310_vm1, %v295_v20 }
  0x9d   : > { %316 = vst.msk [vmem:[%s517_s22 + $0x14] sm:$0xf] %vm310_vm1, %v299_v21 }
  0x9f   : > { %v276_v22 = vpop.f32.mrf.mxu2  ;;  %v286_v23 = vpop.f32.mrf.mxu3 }
  0xa0   : > { %v303_v24 = vpack.c.bf16 %v276_v22, %v276_v22  ;;  %v307_v25 = vpack.c.bf16 %v286_v23, %v286_v23  ;;  %v259_v26 = vpop.f32.mrf.mxu0  ;;  %v269_v27 = vpop.f32.mrf.mxu1 }
  0xa1   : > { %v296_v28 = vpack.c.bf16 %v259_v26, %v259_v26  ;;  %v300_v29 = vpack.c.bf16 %v269_v27, %v269_v27 }
  0xa2   : > { %320 = vst.msk [vmem:[%s517_s22 + $0x24] sm:$0xf] %vm310_vm1, %v303_v24 }
  0xa3   : > { %324 = vst.msk [vmem:[%s517_s22 + $0x34] sm:$0xf] %vm310_vm1, %v307_v25 }
  0xa4   : > { %313 = vst.msk [vmem:[%s517_s22 + $0x8] sm:$0xf] %vm310_vm1, %v296_v28 }
  0xa5   : > { %317 = vst.msk [vmem:[%s517_s22 + $0x18] sm:$0xf] %vm310_vm1, %v300_v29 }
  0xa7   : > { %v279_v30 = vpop.f32.mrf.mxu2  ;;  %v289_v31 = vpop.f32.mrf.mxu3 }
  0xa8   : > { %v304_v32 = vpack.c.bf16 %v279_v30, %v279_v30  ;;  %v308_v33 = vpack.c.bf16 %v289_v31, %v289_v31  ;;  %v261_v34 = vpop.f32.mrf.mxu0  ;;  %v271_v35 = vpop.f32.mrf.mxu1 }
  0xa9   : > { %v297_v36 = vpack.c.bf16 %v261_v34, %v261_v34  ;;  %v301_v37 = vpack.c.bf16 %v271_v35, %v271_v35 }
  0xaa   : > { %321 = vst.msk [vmem:[%s517_s22 + $0x28] sm:$0xf] %vm310_vm1, %v304_v32 }
  0xab   : > { %325 = vst.msk [vmem:[%s517_s22 + $0x38] sm:$0xf] %vm310_vm1, %v308_v33 }
  0xac   : > { %314 = vst.msk [vmem:[%s517_s22 + $0xc] sm:$0xf] %vm310_vm1, %v297_v36 }
  0xad   : > { %318 = vst.msk [vmem:[%s517_s22 + $0x1c] sm:$0xf] %vm310_vm1, %v301_v37 }
  0xaf   : > { %v281_v38 = vpop.f32.mrf.mxu2  ;;  %v291_v39 = vpop.f32.mrf.mxu3 }
  0xb0   : > { %v305_v40 = vpack.c.bf16 %v281_v38, %v281_v38  ;;  %v309_v41 = vpack.c.bf16 %v291_v39, %v291_v39 }
  0xb2   : > { %322 = vst.msk [vmem:[%s517_s22 + $0x2c] sm:$0xf] %vm310_vm1, %v305_v40 }
  0xb3   : > { %326 = vst.msk [vmem:[%s517_s22 + $0x3c] sm:$0xf] %vm310_vm1, %v309_v41 }
  0xb4 PF: > { %s12_s9 = sadd.s32 1, %s472_s9  }
  0xb5   : > { %p9_p4 = scmp.ge.s32.totalorder %s12_s9, 6  }
  0xb7   :  { %11 = sbr.rel (!%p9_p4) target bundleno = 1 (0x1), region = 58 }

// kernel: _lambda_.5
= control target key start
LH: loop header
LB: loop body
LE: loop exit
PB: predicated region body
PF: predicated region fallthrough
CT: control target
= control target key end

     0   :  { %s1436_s12 = smov 0   ;;  %s1700_s0 = inlined_call_operand.vmem [shape: bf16[512,512], index: 0, kind: input, shape index: {}]   ;;  %s1701_s1 = inlined_call_operand.vmem [shape: bf16[512,32], index: 1, kind: input, shape index: {}]   ;;  %s1702_s2 = inlined_call_operand.vmem [shape: bf16[32,32], index: 2, kind: input, shape index: {}]   ;;  %s1703_s3 = inlined_call_operand.vmem [shape: bf16[512,32], index: 3, kind: output, shape index: {}]  }
   0x1 LB: > { %s1025_s13 = sadd.s32 4294967295, %s1414_s12   ;;  %p1029_p0 = scmp.ge.s32.totalorder %s1414_s12, 1  ;;  %s1414_s12 = sphi %s1436_s12, %s13_s12  }
   0x2   : > { %p139_p1 = scmp.lt.s32.totalorder %s1414_s12, 5 }
   0x4   : > { %p140_p2 = pnand %p1029_p0, %p139_p1 }
   0x5   : > { %s1030_s20 = sshll.u32 (!%p140_p2), %s1025_s13, 4 }
   0x6   : > { %143 = sbr.rel (%p140_p2) target bundleno = 473 (0x1d9), region = 32  ;;  %p165_p3 = scmp.lt.s32.totalorder (!%p140_p2), %s1030_s20, 63 }
   0xb   : > { %v1349_v0 = vld [vmem:[%s1701_s1 + $0x38] sm:$0xff]  ;;  %v1348_v1 = vld [vmem:[%s1701_s1 + $0x30] sm:$0xff]  ;;  %v1347_v2 = vld [vmem:[%s1701_s1 + $0x28] sm:$0xff]  ;;  %s1705_s20 = smov (!%p165_p3, %s1030_s20), 63  ;;  %vm862_vm0 = vcmask 261120   ;;  %vm952_vm1 = vcmask 257024  }
   0xc   : > { %1376 = vmatpush.bf16.msra.mxu1 %v1349_v0  ;;  %1377 = vmatpush.bf16.msra.mxu2 %v1349_v0  ;;  %v1346_v3 = vld [vmem:[%s1701_s1 + $0x20] sm:$0xff]  ;;  %v1345_v4 = vld [vmem:[%s1701_s1 + $0x18] sm:$0xff]  ;;  %v1344_v5 = vld [vmem:[%s1701_s1 + $0x10] sm:$0xff]  ;;  %s1309_s27 = sshll.u32 %s1705_s20, 4 }
   0xd   : > { %1378 = vmatpush.bf16.msra.mxu3 %v1349_v0  ;;  %626 = vmatpush.bf16.msra.mxu0 %v1349_v0  ;;  %v1343_v6 = vld [vmem:[%s1701_s1 + $0x8] sm:$0xff]  ;;  %s1471_s5 = scalar_lea.vmem %s1700_s0, %s1309_s27  ;;  %v1342_v7 = vld [vmem:[%s1701_s1] sm:$0xff]  ;;  %v1365_v14 = vld [vmem:[%s1701_s1 + $0xb8] sm:$0xff] }
   0xe   : > { %v1069_v8 = vld [vmem:[%s1471_s5 + $0x40] sm:$0xf]  ;;  %v1320_v9 = vld [vmem:[%s1471_s5 + $0x4c] sm:$0xf0]  ;;  %v1357_v15 = vld [vmem:[%s1701_s1 + $0x78] sm:$0xff] }
   0xf   : > { %v1101_v10 = vld [vmem:[%s1471_s5 + $0x80] sm:$0xf]  ;;  %v1328_v11 = vld [vmem:[%s1471_s5 + $0x8c] sm:$0xf0]  ;;  %v1373_v16 = vld [vmem:[%s1701_s1 + $0xf8] sm:$0xff]  ;;  %v1070_v17 = vor.u32 %v1320_v9, %v1069_v8 }
  0x10   : > { %1379 = vmatpush.bf16.msra.mxu1 %v1348_v1  ;;  %1380 = vmatpush.bf16.msra.mxu2 %v1348_v1  ;;  %v1133_v12 = vld [vmem:[%s1471_s5 + $0xc0] sm:$0xf]  ;;  %v1336_v13 = vld [vmem:[%s1471_s5 + $0xcc] sm:$0xf0]  ;;  %v1102_v18 = vor.u32 %v1328_v11, %v1101_v10  ;;  %v1363_v26 = vld [vmem:[%s1701_s1 + $0xa8] sm:$0xff] }
  0x11   : > { %1381 = vmatpush.bf16.msra.mxu3 %v1348_v1  ;;  %627 = vmatpush.bf16.msra.mxu0 %v1348_v1  ;;  %v1134_v19 = vor.u32 %v1336_v13, %v1133_v12  ;;  %v1037_v20 = vld [vmem:[%s1471_s5] sm:$0xf]  ;;  %v1312_v21 = vld [vmem:[%s1471_s5 + $0xc] sm:$0xf0]  ;;  %v1355_v27 = vld [vmem:[%s1701_s1 + $0x68] sm:$0xff] }
  0x12   : > { %v1364_v22 = vld [vmem:[%s1701_s1 + $0xb0] sm:$0xff]  ;;  %v1038_v25 = vor.u32 %v1312_v21, %v1037_v20  ;;  %v1371_v28 = vld [vmem:[%s1701_s1 + $0xe8] sm:$0xff]  ;;  %v1362_v29 = vld [vmem:[%s1701_s1 + $0xa0] sm:$0xff] }
  0x13   : > { %v1356_v23 = vld [vmem:[%s1701_s1 + $0x70] sm:$0xff]  ;;  %v1354_v30 = vld [vmem:[%s1701_s1 + $0x60] sm:$0xff]  ;;  %v1361_v38 = vld [vmem:[%s1701_s1 + $0x98] sm:$0xff] }
  0x14   : > { %1382 = vmatpush.bf16.msra.mxu1 %v1347_v2  ;;  %1383 = vmatpush.bf16.msra.mxu2 %v1347_v2  ;;  %v1372_v24 = vld [vmem:[%s1701_s1 + $0xf0] sm:$0xff]  ;;  %v1370_v31 = vld [vmem:[%s1701_s1 + $0xe0] sm:$0xff]  ;;  %v1353_v39 = vld [vmem:[%s1701_s1 + $0x58] sm:$0xff] }
  0x15   : > { %1384 = vmatpush.bf16.msra.mxu3 %v1347_v2  ;;  %628 = vmatpush.bf16.msra.mxu0 %v1347_v2  ;;  %v1085_v32 = vld [vmem:[%s1471_s5 + $0x60] sm:$0xf]  ;;  %v1324_v33 = vld [vmem:[%s1471_s5 + $0x6c] sm:$0xf0]  ;;  %v1369_v40 = vld [vmem:[%s1701_s1 + $0xd8] sm:$0xff] }
  0x16   : > { %v1117_v34 = vld [vmem:[%s1471_s5 + $0xa0] sm:$0xf]  ;;  %v1332_v35 = vld [vmem:[%s1471_s5 + $0xac] sm:$0xf0]  ;;  %v1086_v41 = vor.u32 %v1324_v33, %v1085_v32  ;;  %v1359_v50 = vld [vmem:[%s1701_s1 + $0x88] sm:$0xff] }
  0x17   : > { %v1149_v36 = vld [vmem:[%s1471_s5 + $0xe0] sm:$0xf]  ;;  %v1340_v37 = vld [vmem:[%s1471_s5 + $0xec] sm:$0xf0]  ;;  %v1118_v42 = vor.u32 %v1332_v35, %v1117_v34  ;;  %v1351_v51 = vld [vmem:[%s1701_s1 + $0x48] sm:$0xff] }
  0x18   : > { %1385 = vmatpush.bf16.msra.mxu1 %v1346_v3  ;;  %1386 = vmatpush.bf16.msra.mxu2 %v1346_v3  ;;  %v1150_v43 = vor.u32 %v1340_v37, %v1149_v36  ;;  %v1053_v44 = vld [vmem:[%s1471_s5 + $0x20] sm:$0xf]  ;;  %v1316_v45 = vld [vmem:[%s1471_s5 + $0x2c] sm:$0xf0]  ;;  %v1367_v52 = vld [vmem:[%s1701_s1 + $0xc8] sm:$0xff] }
  0x19   : > { %1387 = vmatpush.bf16.msra.mxu3 %v1346_v3  ;;  %629 = vmatpush.bf16.msra.mxu0 %v1346_v3  ;;  %v1360_v46 = vld [vmem:[%s1701_s1 + $0x90] sm:$0xff]  ;;  %v1054_v49 = vor.u32 %v1316_v45, %v1053_v44  ;;  %v1358_v53 = vld [vmem:[%s1701_s1 + $0x80] sm:$0xff]  ;;  %v1045_v58 = vld [vmem:[%s1471_s5 + $0x8] sm:$0xf] }
  0x1a   : > { %v1352_v47 = vld [vmem:[%s1701_s1 + $0x50] sm:$0xff]  ;;  %v1350_v54 = vld [vmem:[%s1701_s1 + $0x40] sm:$0xff]  ;;  %v1313_v59 = vld [vmem:[%s1471_s5 + $0x14] sm:$0xf0] }
  0x1b   : > { %v1368_v48 = vld [vmem:[%s1701_s1 + $0xd0] sm:$0xff]  ;;  %v1366_v55 = vld [vmem:[%s1701_s1 + $0xc0] sm:$0xff]  ;;  %v1311_v60 = vld [vmem:[%s1471_s5 + $0xc] sm:$0xf]  ;;  %v1046_v63 = vor.u32 %v1313_v59, %v1045_v58 }
  0x1c   : > { %1388 = vmatpush.bf16.msra.mxu1 %v1345_v4  ;;  %1389 = vmatpush.bf16.msra.mxu2 %v1345_v4  ;;  %v1310_v56 = vld [vmem:[%s1471_s5 + $0x4] sm:$0xf]  ;;  %v1039_v57 = vld [vmem:[%s1471_s5 + $0x10] sm:$0xf0]  ;;  %v1047_v61 = vld [vmem:[%s1471_s5 + $0x18] sm:$0xf0] }
  0x1d   : > { %1390 = vmatpush.bf16.msra.mxu3 %v1345_v4  ;;  %630 = vmatpush.bf16.msra.mxu0 %v1345_v4  ;;  %v1042_v62 = vor.u32 %v1310_v56, %v1039_v57  ;;  %v1050_v0 = vor.u32 %v1311_v60, %v1047_v61  ;;  %v1314_v1 = vld [vmem:[%s1471_s5 + $0x24] sm:$0xf]  ;;  %v1055_v2 = vld [vmem:[%s1471_s5 + $0x30] sm:$0xf0]  ;;  %v1061_v3 = vld [vmem:[%s1471_s5 + $0x28] sm:$0xf] }
  0x1e   : > { %v1317_v4 = vld [vmem:[%s1471_s5 + $0x34] sm:$0xf0]  ;;  %v1318_v10 = vld [vmem:[%s1471_s5 + $0x44] sm:$0xf]  ;;  %v1071_v11 = vld [vmem:[%s1471_s5 + $0x50] sm:$0xf0] }
  0x1f   : > { %v1062_v8 = vor.u32 %v1317_v4, %v1061_v3  ;;  %v1077_v12 = vld [vmem:[%s1471_s5 + $0x48] sm:$0xf]  ;;  %v1321_v13 = vld [vmem:[%s1471_s5 + $0x54] sm:$0xf0]  ;;  %v1087_v20 = vld [vmem:[%s1471_s5 + $0x70] sm:$0xf0] }
  0x20   : > { %1391 = vmatpush.bf16.msra.mxu1 %v1344_v5  ;;  %1392 = vmatpush.bf16.msra.mxu2 %v1344_v5  ;;  %v1093_v21 = vld [vmem:[%s1471_s5 + $0x68] sm:$0xf]  ;;  %v1327_v32 = vld [vmem:[%s1471_s5 + $0x8c] sm:$0xf]  ;;  %v1111_v33 = vld [vmem:[%s1471_s5 + $0x98] sm:$0xf0] }
  0x21   : > { %1393 = vmatpush.bf16.msra.mxu3 %v1344_v5  ;;  %631 = vmatpush.bf16.msra.mxu0 %v1344_v5  ;;  %v1315_v5 = vld [vmem:[%s1471_s5 + $0x2c] sm:$0xf]  ;;  %v1114_v36 = vor.u32 %v1327_v32, %v1111_v33  ;;  %v1330_v37 = vld [vmem:[%s1471_s5 + $0xa4] sm:$0xf] }
  0x22   : > { %v1338_v60 = vld [vmem:[%s1471_s5 + $0xe4] sm:$0xf] }
  0x23   : > { %v1374_v61 = vld [vmem:[%s1702_s2] sm:$0xff] }
  0x24   : > { %1394 = vmatpush.bf16.msra.mxu1 %v1343_v6  ;;  %1395 = vmatpush.bf16.msra.mxu2 %v1343_v6 }
  0x25   : > { %1396 = vmatpush.bf16.msra.mxu3 %v1343_v6  ;;  %632 = vmatpush.bf16.msra.mxu0 %v1343_v6  ;;  %v1063_v6 = vld [vmem:[%s1471_s5 + $0x38] sm:$0xf0] }
  0x26   : > { %v1066_v9 = vor.u32 %v1315_v5, %v1063_v6 }
  0x28   : > { %1397 = vmatpush.bf16.msra.mxu1 %v1342_v7  ;;  %1398 = vmatpush.bf16.msra.mxu2 %v1342_v7 }
  0x29   : > { %1399 = vmatpush.bf16.msra.mxu3 %v1342_v7  ;;  %633 = vmatpush.bf16.msra.mxu0 %v1342_v7  ;;  %v1058_v7 = vor.u32 %v1314_v1, %v1055_v2  ;;  %v1339_v1 = vld [vmem:[%s1471_s5 + $0xec] sm:$0xf]  ;;  %v1159_v2 = vld [vmem:[%s1471_s5 + $0xf8] sm:$0xf0] }
  0x2b   : > { %644 = vmatmul.bf16.vlgmr.msra.gmra.mxu1 %v1070_v17  ;;  %654 = vmatmul.bf16.vlgmr.msra.gmra.mxu2 %v1102_v18  ;;  %v1078_v17 = vor.u32 %v1321_v13, %v1077_v12 }
  0x2c   : > { %724 = vmatpush.bf16.msrb.mxu2 %v1365_v14  ;;  %675 = vmatpush.bf16.msrb.mxu1 %v1357_v15  ;;  %v1319_v14 = vld [vmem:[%s1471_s5 + $0x4c] sm:$0xf]  ;;  %v1079_v15 = vld [vmem:[%s1471_s5 + $0x58] sm:$0xf0] }
  0x2d   : > { %773 = vmatpush.bf16.msrb.mxu3 %v1373_v16  ;;  %634 = vmatmul.bf16.vlgmr.msra.gmra.mxu0 %v1038_v25  ;;  %v1074_v16 = vor.u32 %v1318_v10, %v1071_v11  ;;  %v1082_v18 = vor.u32 %v1319_v14, %v1079_v15 }
  0x2e   : > { %664 = vmatmul.bf16.vlgmr.msra.gmra.mxu3 %v1134_v19  ;;  %v1322_v19 = vld [vmem:[%s1471_s5 + $0x64] sm:$0xf] }
  0x2f   : > { %v1090_v25 = vor.u32 %v1322_v19, %v1087_v20 }
  0x30   : > { %725 = vmatpush.bf16.msrb.mxu2 %v1364_v22  ;;  %676 = vmatpush.bf16.msrb.mxu1 %v1356_v23  ;;  %v1325_v22 = vld [vmem:[%s1471_s5 + $0x74] sm:$0xf0]  ;;  %v1323_v23 = vld [vmem:[%s1471_s5 + $0x6c] sm:$0xf] }
  0x31   : > { %774 = vmatpush.bf16.msrb.mxu3 %v1372_v24  ;;  %v1095_v24 = vld [vmem:[%s1471_s5 + $0x78] sm:$0xf0] }
  0x34   : > { %726 = vmatpush.bf16.msrb.mxu2 %v1363_v26  ;;  %677 = vmatpush.bf16.msrb.mxu1 %v1355_v27  ;;  %v1094_v26 = vor.u32 %v1325_v22, %v1093_v21  ;;  %v1098_v27 = vor.u32 %v1323_v23, %v1095_v24 }
  0x35   : > { %775 = vmatpush.bf16.msrb.mxu3 %v1371_v28  ;;  %v1326_v28 = vld [vmem:[%s1471_s5 + $0x84] sm:$0xf] }
  0x38   : > { %727 = vmatpush.bf16.msrb.mxu2 %v1362_v29  ;;  %678 = vmatpush.bf16.msrb.mxu1 %v1354_v30  ;;  %v1103_v29 = vld [vmem:[%s1471_s5 + $0x90] sm:$0xf0]  ;;  %v1109_v30 = vld [vmem:[%s1471_s5 + $0x88] sm:$0xf] }
  0x39   : > { %776 = vmatpush.bf16.msrb.mxu3 %v1370_v31  ;;  %v1329_v31 = vld [vmem:[%s1471_s5 + $0x94] sm:$0xf0]  ;;  %v1106_v34 = vor.u32 %v1326_v28, %v1103_v29 }
  0x3a   : > { %v1110_v35 = vor.u32 %v1329_v31, %v1109_v30 }
  0x3b   : > { %649 = vmatmul.bf16.gmra.mxu1 %v1086_v41  ;;  %659 = vmatmul.bf16.gmra.mxu2 %v1118_v42  ;;  %v1331_v41 = vld [vmem:[%s1471_s5 + $0xac] sm:$0xf]  ;;  %v1127_v42 = vld [vmem:[%s1471_s5 + $0xb8] sm:$0xf0] }
  0x3c   : > { %728 = vmatpush.bf16.msrb.mxu2 %v1361_v38  ;;  %679 = vmatpush.bf16.msrb.mxu1 %v1353_v39  ;;  %v1119_v38 = vld [vmem:[%s1471_s5 + $0xb0] sm:$0xf0]  ;;  %v1125_v39 = vld [vmem:[%s1471_s5 + $0xa8] sm:$0xf]  ;;  %v1130_v45 = vor.u32 %v1331_v41, %v1127_v42 }
  0x3d   : > { %777 = vmatpush.bf16.msrb.mxu3 %v1369_v40  ;;  %639 = vmatmul.bf16.gmra.mxu0 %v1054_v49  ;;  %v1333_v40 = vld [vmem:[%s1471_s5 + $0xb4] sm:$0xf0]  ;;  %v1141_v49 = vld [vmem:[%s1471_s5 + $0xc8] sm:$0xf] }
  0x3e   : > { %669 = vmatmul.bf16.gmra.mxu3 %v1150_v43  ;;  %v1122_v43 = vor.u32 %v1330_v37, %v1119_v38  ;;  %v1126_v44 = vor.u32 %v1333_v40, %v1125_v39 }
  0x40   : > { %729 = vmatpush.bf16.msrb.mxu2 %v1360_v46  ;;  %680 = vmatpush.bf16.msrb.mxu1 %v1352_v47  ;;  %v1375_v46 = vld [vmem:[%s1702_s2 + $0x8] sm:$0xff]  ;;  %v1334_v47 = vld [vmem:[%s1471_s5 + $0xc4] sm:$0xf] }
  0x41   : > { %778 = vmatpush.bf16.msrb.mxu3 %v1368_v48  ;;  %893 = vmatpush.bf16.msrb.mxu0 %v1375_v46  ;;  %v1135_v48 = vld [vmem:[%s1471_s5 + $0xd0] sm:$0xf0] }
  0x44   : > { %730 = vmatpush.bf16.msrb.mxu2 %v1359_v50  ;;  %681 = vmatpush.bf16.msrb.mxu1 %v1351_v51  ;;  %v1337_v50 = vld [vmem:[%s1471_s5 + $0xd4] sm:$0xf0]  ;;  %v1335_v51 = vld [vmem:[%s1471_s5 + $0xcc] sm:$0xf] }
  0x45   : > { %779 = vmatpush.bf16.msrb.mxu3 %v1367_v52  ;;  %v1143_v52 = vld [vmem:[%s1471_s5 + $0xd8] sm:$0xf0]  ;;  %894 = vmatpush.bf16.msrb.mxu0 %v1374_v61 }
  0x46   : > { %v1146_v56 = vor.u32 %v1335_v51, %v1143_v52 }
  0x48   : > { %731 = vmatpush.bf16.msrb.mxu2 %v1358_v53  ;;  %682 = vmatpush.bf16.msrb.mxu1 %v1350_v54  ;;  %v1138_v53 = vor.u32 %v1334_v47, %v1135_v48  ;;  %v1142_v54 = vor.u32 %v1337_v50, %v1141_v49 }
  0x49   : > { %780 = vmatpush.bf16.msrb.mxu3 %v1366_v55 }
  0x4b   : > { %683 = vmatmul.bf16.vlgmr.msrb.gmra.mxu1 %v1042_v62  ;;  %732 = vmatmul.bf16.vlgmr.msrb.gmra.mxu2 %v1046_v63  ;;  %v1151_v62 = vld [vmem:[%s1471_s5 + $0xf0] sm:$0xf0]  ;;  %v1157_v63 = vld [vmem:[%s1471_s5 + $0xe8] sm:$0xf] }
  0x4c   : > { %v1154_v5 = vor.u32 %v1338_v60, %v1151_v62 }
  0x4e   : > { %781 = vmatmul.bf16.vlgmr.msrb.gmra.mxu3 %v1050_v0  ;;  %v1341_v0 = vld [vmem:[%s1471_s5 + $0xf4] sm:$0xf0]  ;;  %s1034_s5 = sshll.u32 %s1705_s20, 2 }
  0x4f   : > { %v1158_v6 = vor.u32 %v1341_v0, %v1157_v63  ;;  %s1663_s15 = scalar_lea.vmem %s1703_s3, %s1034_s5 }
  0x5b   : > { %688 = vmatmul.bf16.gmra.mxu1 %v1058_v7  ;;  %737 = vmatmul.bf16.gmra.mxu2 %v1062_v8  ;;  %v1162_v8 = vor.u32 %v1339_v1, %v1159_v2 }
  0x5e   : > { %786 = vmatmul.bf16.gmra.mxu3 %v1066_v9 }
  0x6b   : > { %693 = vmatmul.bf16.gmra.mxu1 %v1074_v16  ;;  %742 = vmatmul.bf16.gmra.mxu2 %v1078_v17 }
  0x6e   : > { %791 = vmatmul.bf16.gmra.mxu3 %v1082_v18 }
  0x7b   : > { %698 = vmatmul.bf16.gmra.mxu1 %v1090_v25  ;;  %747 = vmatmul.bf16.gmra.mxu2 %v1094_v26 }
  0x7e   : > { %796 = vmatmul.bf16.gmra.mxu3 %v1098_v27 }
  0x8b   : > { %703 = vmatmul.bf16.gmra.mxu1 %v1106_v34  ;;  %752 = vmatmul.bf16.gmra.mxu2 %v1110_v35 }
  0x8e   : > { %801 = vmatmul.bf16.gmra.mxu3 %v1114_v36 }
  0x9b   : > { %708 = vmatmul.bf16.gmra.mxu1 %v1122_v43  ;;  %757 = vmatmul.bf16.gmra.mxu2 %v1126_v44 }
  0x9e   : > { %806 = vmatmul.bf16.gmra.mxu3 %v1130_v45 }
  0xa8   : > { %v1609_v55 = vpop.f32.mrf.mxu1 }
  0xaa   : > { %v635_v12 = vpop.f32.mrf.mxu0 }
  0xab   : > { %713 = vmatmul.bf16.gmra.mxu1 %v1138_v53  ;;  %762 = vmatmul.bf16.gmra.mxu2 %v1142_v54 }
  0xae   : > { %811 = vmatmul.bf16.gmra.mxu3 %v1146_v56  ;;  %v1611_v57 = vpop.f32.mrf.mxu2 }
  0xb0   : > { %v1615_v59 = vpop.f32.mrf.mxu1 }
  0xb1   : > { %v1613_v58 = vpop.f32.mrf.mxu3 }
  0xb2   : > { %v637_v19 = vpop.f32.mrf.mxu0 }
  0xb6   : > { %v1626_v3 = vpop.f32.mrf.mxu2 }
  0xb8   : > { %v1630_v7 = vpop.f32.mrf.mxu1 }
  0xb9   : > { %v1628_v4 = vpop.f32.mrf.mxu3 }
  0xba   : > { %v640_v29 = vpop.f32.mrf.mxu0 }
  0xbb   : > { %718 = vmatmul.bf16.gmra.mxu1 %v1154_v5  ;;  %767 = vmatmul.bf16.gmra.mxu2 %v1158_v6 }
  0xbe   : > { %816 = vmatmul.bf16.gmra.mxu3 %v1162_v8  ;;  %v1632_v9 = vpop.f32.mrf.mxu2 }
  0xc0   : > { %v652_v11 = vpop.f32.mrf.mxu1 }
  0xc1   : > { %v1634_v10 = vpop.f32.mrf.mxu3 }
  0xc2   : > { %v642_v38 = vpop.f32.mrf.mxu0 }
  0xc6   : > { %v1636_v13 = vpop.f32.mrf.mxu2 }
  0xc8   : > { %v684_v15 = vpop.f32.mrf.mxu1 }
  0xc9   : > { %v1638_v14 = vpop.f32.mrf.mxu3  ;;  %v685_v17 = vadd.f32 %v684_v15, %v635_v12 }
  0xce   : > { %v733_v16 = vpop.f32.mrf.mxu2 }
  0xcf   : > { %v734_v21 = vadd.f32 %v733_v16, %v685_v17 }
  0xd0   : > { %v686_v20 = vpop.f32.mrf.mxu1 }
  0xd1   : > { %v782_v18 = vpop.f32.mrf.mxu3  ;;  %v687_v22 = vadd.f32 %v686_v20, %v637_v19 }
  0xd2   : > { %v783_v24 = vadd.f32 %v782_v18, %v734_v21 }
  0xd4   : > { %v822_v30 = vmax.f32 %v783_v24, 0.0 }
  0xd6   : > { %v735_v23 = vpop.f32.mrf.mxu2 }
  0xd7   : > { %v736_v25 = vadd.f32 %v735_v23, %v687_v22 }
  0xd8   : > { %v689_v27 = vpop.f32.mrf.mxu1 }
  0xd9   : > { %v784_v26 = vpop.f32.mrf.mxu3  ;;  %v690_v34 = vadd.f32 %v689_v27, %v640_v29 }
  0xda   : > { %v785_v28 = vadd.f32 %v784_v26, %v736_v25 }
  0xdc   : > { %v823_v31 = vmax.f32 %v785_v28, 0.0 }
  0xde   : > { %v838_v32 = vpack.c.bf16 %v823_v31, %v822_v30  ;;  %v738_v33 = vpop.f32.mrf.mxu2 }
  0xdf   : > { %v739_v37 = vadd.f32 %v738_v33, %v690_v34 }
  0xe0   : > { %1299 = vmatmul.msk.bf16.vlgmr.msrb.gmra.mxu0 %vm862_vm0, %v838_v32  ;;  %v691_v36 = vpop.f32.mrf.mxu1 }
  0xe1   : > { %v787_v35 = vpop.f32.mrf.mxu3  ;;  %v692_v39 = vadd.f32 %v691_v36, %v642_v38 }
  0xe2   : > { %v788_v41 = vadd.f32 %v787_v35, %v739_v37 }
  0xe4   : > { %v824_v46 = vmax.f32 %v788_v41, 0.0 }
  0xe6   : > { %v740_v40 = vpop.f32.mrf.mxu2 }
  0xe7   : > { %v741_v42 = vadd.f32 %v740_v40, %v692_v39 }
  0xe8   : > { %v694_v44 = vpop.f32.mrf.mxu1 }
  0xe9   : > { %v789_v43 = vpop.f32.mrf.mxu3  ;;  %v695_v52 = vadd.f32 %v694_v44, %v1609_v55 }
  0xea   : > { %v790_v45 = vadd.f32 %v789_v43, %v741_v42 }
  0xec   : > { %v825_v47 = vmax.f32 %v790_v45, 0.0 }
  0xee   : > { %v839_v48 = vpack.c.bf16 %v825_v47, %v824_v46  ;;  %v743_v49 = vpop.f32.mrf.mxu2 }
  0xef   : > { %v744_v53 = vadd.f32 %v743_v49, %v695_v52 }
  0xf0   : > { %1300 = vmatmul.msk.bf16.gmra.mxu0 %vm862_vm0, %v839_v48  ;;  %v696_v51 = vpop.f32.mrf.mxu1 }
  0xf1   : > { %v792_v50 = vpop.f32.mrf.mxu3  ;;  %v697_v54 = vadd.f32 %v696_v51, %v1615_v59 }
  0xf2   : > { %v793_v60 = vadd.f32 %v792_v50, %v744_v53 }
  0xf4   : > { %v826_v1 = vmax.f32 %v793_v60, 0.0 }
  0xf6   : > { %v745_v56 = vpop.f32.mrf.mxu2 }
  0xf7   : > { %v746_v61 = vadd.f32 %v745_v56, %v697_v54 }
  0xf8   : > { %v699_v63 = vpop.f32.mrf.mxu1 }
  0xf9   : > { %v794_v62 = vpop.f32.mrf.mxu3  ;;  %v700_v15 = vadd.f32 %v699_v63, %v1630_v7 }
  0xfa   : > { %v795_v0 = vadd.f32 %v794_v62, %v746_v61 }
  0xfc   : > { %v827_v2 = vmax.f32 %v795_v0, 0.0 }
  0xfe   : > { %v840_v5 = vpack.c.bf16 %v827_v2, %v826_v1  ;;  %v748_v6 = vpop.f32.mrf.mxu2 }
  0xff   : > { %v749_v55 = vadd.f32 %v748_v6, %v700_v15 }
 0x100   : > { %1301 = vmatmul.msk.bf16.gmra.mxu0 %vm862_vm0, %v840_v5  ;;  %v701_v12 = vpop.f32.mrf.mxu1 }
 0x101   : > { %v797_v8 = vpop.f32.mrf.mxu3  ;;  %v702_v16 = vadd.f32 %v701_v12, %v652_v11 }
 0x102   : > { %v798_v59 = vadd.f32 %v797_v8, %v749_v55 }
 0x104   : > { %v828_v22 = vmax.f32 %v798_v59, 0.0 }
 0x106   : > { %v750_v17 = vpop.f32.mrf.mxu2 }
 0x107   : > { %v751_v18 = vadd.f32 %v750_v17, %v702_v16 }
 0x108   : > { %v704_v20 = vpop.f32.mrf.mxu1 }
 0x109   : > { %v799_v19 = vpop.f32.mrf.mxu3  ;;  %v705_v28 = vadd.f32 %v704_v20, %v1611_v57 }
 0x10a   : > { %v800_v21 = vadd.f32 %v799_v19, %v751_v18 }
 0x10c   : > { %v829_v23 = vmax.f32 %v800_v21, 0.0 }
 0x10e   : > { %v841_v24 = vpack.c.bf16 %v829_v23, %v828_v22  ;;  %v753_v25 = vpop.f32.mrf.mxu2 }
 0x10f   : > { %v754_v29 = vadd.f32 %v753_v25, %v705_v28 }
 0x110   : > { %1302 = vmatmul.msk.bf16.gmra.mxu0 %vm862_vm0, %v841_v24  ;;  %v706_v27 = vpop.f32.mrf.mxu1 }
 0x111   : > { %v802_v26 = vpop.f32.mrf.mxu3  ;;  %v707_v7 = vadd.f32 %v706_v27, %v1626_v3 }
 0x112   : > { %v803_v30 = vadd.f32 %v802_v26, %v754_v29 }
 0x114   : > { %v830_v35 = vmax.f32 %v803_v30, 0.0 }
 0x116   : > { %v755_v11 = vpop.f32.mrf.mxu2 }
 0x117   : > { %v756_v31 = vadd.f32 %v755_v11, %v707_v7 }
 0x118   : > { %v709_v33 = vpop.f32.mrf.mxu1 }
 0x119   : > { %v804_v32 = vpop.f32.mrf.mxu3  ;;  %v710_v41 = vadd.f32 %v709_v33, %v1632_v9 }
 0x11a   : > { %v805_v34 = vadd.f32 %v804_v32, %v756_v31 }
 0x11c   : > { %v831_v36 = vmax.f32 %v805_v34, 0.0 }
 0x11e   : > { %v842_v37 = vpack.c.bf16 %v831_v36, %v830_v35  ;;  %v758_v38 = vpop.f32.mrf.mxu2 }
 0x11f   : > { %v759_v57 = vadd.f32 %v758_v38, %v710_v41 }
 0x120   : > { %1303 = vmatmul.msk.bf16.gmra.mxu0 %vm862_vm0, %v842_v37  ;;  %v711_v40 = vpop.f32.mrf.mxu1 }
 0x121   : > { %v807_v39 = vpop.f32.mrf.mxu3  ;;  %v712_v42 = vadd.f32 %v711_v40, %v1636_v13 }
 0x122   : > { %v808_v43 = vadd.f32 %v807_v39, %v759_v57 }
 0x124   : > { %v832_v48 = vmax.f32 %v808_v43, 0.0 }
 0x126   : > { %v760_v3 = vpop.f32.mrf.mxu2 }
 0x127   : > { %v761_v44 = vadd.f32 %v760_v3, %v712_v42 }
 0x128   : > { %v714_v46 = vpop.f32.mrf.mxu1 }
 0x129   : > { %v809_v45 = vpop.f32.mrf.mxu3  ;;  %v715_v54 = vadd.f32 %v714_v46, %v1613_v58 }
 0x12a   : > { %v810_v47 = vadd.f32 %v809_v45, %v761_v44 }
 0x12c   : > { %v833_v49 = vmax.f32 %v810_v47, 0.0 }
 0x12e   : > { %v843_v50 = vpack.c.bf16 %v833_v49, %v832_v48  ;;  %v763_v51 = vpop.f32.mrf.mxu2 }
 0x12f   : > { %v764_v9 = vadd.f32 %v763_v51, %v715_v54 }
 0x130   : > { %1304 = vmatmul.msk.bf16.gmra.mxu0 %vm862_vm0, %v843_v50  ;;  %v716_v53 = vpop.f32.mrf.mxu1 }
 0x131   : > { %v812_v52 = vpop.f32.mrf.mxu3  ;;  %v717_v56 = vadd.f32 %v716_v53, %v1628_v4 }
 0x132   : > { %v813_v60 = vadd.f32 %v812_v52, %v764_v9 }
 0x134   : > { %v834_v1 = vmax.f32 %v813_v60, 0.0 }
 0x136   : > { %v765_v13 = vpop.f32.mrf.mxu2 }
 0x137   : > { %v766_v61 = vadd.f32 %v765_v13, %v717_v56 }
 0x138   : > { %v719_v63 = vpop.f32.mrf.mxu1 }
 0x139   : > { %v814_v62 = vpop.f32.mrf.mxu3  ;;  %v720_v12 = vadd.f32 %v719_v63, %v1634_v10 }
 0x13a   : > { %v815_v0 = vadd.f32 %v814_v62, %v766_v61 }
 0x13c   : > { %v835_v2 = vmax.f32 %v815_v0, 0.0 }
 0x13e   : > { %v844_v5 = vpack.c.bf16 %v835_v2, %v834_v1  ;;  %v768_v6 = vpop.f32.mrf.mxu2 }
 0x13f   : > { %v769_v15 = vadd.f32 %v768_v6, %v720_v12 }
 0x140   : > { %1305 = vmatmul.msk.bf16.gmra.mxu0 %vm862_vm0, %v844_v5  ;;  %v721_v58 = vpop.f32.mrf.mxu1 }
 0x141   : > { %v817_v8 = vpop.f32.mrf.mxu3  ;;  %v722_v4 = vadd.f32 %v721_v58, %v1638_v14 }
 0x142   : > { %v818_v16 = vadd.f32 %v817_v8, %v769_v15 }
 0x144   : > { %v836_v19 = vmax.f32 %v818_v16, 0.0 }
 0x146   : > { %v770_v55 = vpop.f32.mrf.mxu2 }
 0x147   : > { %v771_v17 = vadd.f32 %v770_v55, %v722_v4 }
 0x149   : > { %v819_v59 = vpop.f32.mrf.mxu3 }
 0x14a   : > { %v820_v18 = vadd.f32 %v819_v59, %v771_v17 }
 0x14c   : > { %v837_v20 = vmax.f32 %v820_v18, 0.0 }
 0x14e   : > { %v845_v21 = vpack.c.bf16 %v837_v20, %v836_v19 }
 0x150   : > { %1306 = vmatmul.msk.bf16.gmra.mxu0 %vm862_vm0, %v845_v21 }
 0x15d   : > { %v896_v10 = vpop.f32.mrf.mxu0 }
 0x15e   : > { %v936_v14 = vpack.c.bf16 %v896_v10, %v896_v10 }
 0x160   : > { %953 = vst.msk [vmem:[%s1663_s15] sm:$0xf] %vm952_vm1, %v936_v14 }
 0x165   : > { %v898_v22 = vpop.f32.mrf.mxu0 }
 0x166   : > { %v937_v23 = vpack.c.bf16 %v898_v22, %v898_v22 }
 0x168   : > { %954 = vst.msk [vmem:[%s1663_s15 + $0x4] sm:$0xf] %vm952_vm1, %v937_v23 }
 0x16d   : > { %v901_v24 = vpop.f32.mrf.mxu0 }
 0x16e   : > { %v938_v25 = vpack.c.bf16 %v901_v24, %v901_v24 }
 0x170   : > { %955 = vst.msk [vmem:[%s1663_s15 + $0x8] sm:$0xf] %vm952_vm1, %v938_v25 }
 0x175   : > { %v903_v26 = vpop.f32.mrf.mxu0 }
 0x176   : > { %v939_v27 = vpack.c.bf16 %v903_v26, %v903_v26 }
 0x178   : > { %956 = vst.msk [vmem:[%s1663_s15 + $0xc] sm:$0xf] %vm952_vm1, %v939_v27 }
 0x17d   : > { %v906_v28 = vpop.f32.mrf.mxu0 }
 0x17e   : > { %v940_v29 = vpack.c.bf16 %v906_v28, %v906_v28 }
 0x180   : > { %957 = vst.msk [vmem:[%s1663_s15 + $0x10] sm:$0xf] %vm952_vm1, %v940_v29 }
 0x185   : > { %v908_v7 = vpop.f32.mrf.mxu0 }
 0x186   : > { %v941_v11 = vpack.c.bf16 %v908_v7, %v908_v7 }
 0x188   : > { %958 = vst.msk [vmem:[%s1663_s15 + $0x14] sm:$0xf] %vm952_vm1, %v941_v11 }
 0x18d   : > { %v911_v30 = vpop.f32.mrf.mxu0 }
 0x18e   : > { %v942_v31 = vpack.c.bf16 %v911_v30, %v911_v30 }
 0x190   : > { %959 = vst.msk [vmem:[%s1663_s15 + $0x18] sm:$0xf] %vm952_vm1, %v942_v31 }
 0x195   : > { %v913_v32 = vpop.f32.mrf.mxu0 }
 0x196   : > { %v943_v33 = vpack.c.bf16 %v913_v32, %v913_v32 }
 0x198   : > { %960 = vst.msk [vmem:[%s1663_s15 + $0x1c] sm:$0xf] %vm952_vm1, %v943_v33 }
 0x19d   : > { %v916_v34 = vpop.f32.mrf.mxu0 }
 0x19e   : > { %v944_v35 = vpack.c.bf16 %v916_v34, %v916_v34 }
 0x1a0   : > { %961 = vst.msk [vmem:[%s1663_s15 + $0x20] sm:$0xf] %vm952_vm1, %v944_v35 }
 0x1a5   : > { %v918_v36 = vpop.f32.mrf.mxu0 }
 0x1a6   : > { %v945_v37 = vpack.c.bf16 %v918_v36, %v918_v36 }
 0x1a8   : > { %962 = vst.msk [vmem:[%s1663_s15 + $0x24] sm:$0xf] %vm952_vm1, %v945_v37 }
 0x1ad   : > { %v921_v38 = vpop.f32.mrf.mxu0 }
 0x1ae   : > { %v946_v39 = vpack.c.bf16 %v921_v38, %v921_v38 }
 0x1b0   : > { %963 = vst.msk [vmem:[%s1663_s15 + $0x28] sm:$0xf] %vm952_vm1, %v946_v39 }
 0x1b5   : > { %v923_v40 = vpop.f32.mrf.mxu0 }
 0x1b6   : > { %v947_v41 = vpack.c.bf16 %v923_v40, %v923_v40 }
 0x1b8   : > { %964 = vst.msk [vmem:[%s1663_s15 + $0x2c] sm:$0xf] %vm952_vm1, %v947_v41 }
 0x1bd   : > { %v926_v57 = vpop.f32.mrf.mxu0 }
 0x1be   : > { %v948_v42 = vpack.c.bf16 %v926_v57, %v926_v57 }
 0x1c0   : > { %965 = vst.msk [vmem:[%s1663_s15 + $0x30] sm:$0xf] %vm952_vm1, %v948_v42 }
 0x1c5   : > { %v928_v3 = vpop.f32.mrf.mxu0 }
 0x1c6   : > { %v949_v43 = vpack.c.bf16 %v928_v3, %v928_v3 }
 0x1c8   : > { %966 = vst.msk [vmem:[%s1663_s15 + $0x34] sm:$0xf] %vm952_vm1, %v949_v43 }
 0x1cd   : > { %v931_v44 = vpop.f32.mrf.mxu0 }
 0x1ce   : > { %v950_v45 = vpack.c.bf16 %v931_v44, %v931_v44 }
 0x1d0   : > { %967 = vst.msk [vmem:[%s1663_s15 + $0x38] sm:$0xf] %vm952_vm1, %v950_v45 }
 0x1d5   : > { %v933_v46 = vpop.f32.mrf.mxu0 }
 0x1d6   : > { %v951_v47 = vpack.c.bf16 %v933_v46, %v933_v46 }
 0x1d8   : > { %968 = vst.msk [vmem:[%s1663_s15 + $0x3c] sm:$0xf] %vm952_vm1, %v951_v47 }
 0x1d9 PF: > { %s13_s12 = sadd.s32 1, %s1414_s12  }
 0x1da   : > { %p10_p4 = scmp.ge.s32.totalorder %s13_s12, 6  }
 0x1dc   :  { %12 = sbr.rel (!%p10_p4) target bundleno = 1 (0x1), region = 62 }

// kernel: _lambda_.6
= control target key start
LH: loop header
LB: loop body
LE: loop exit
PB: predicated region body
PF: predicated region fallthrough
CT: control target
= control target key end

     0   :  { %s1753_s18 = smov 0   ;;  %s2199_s0 = inlined_call_operand.vmem [shape: bf16[512,512], index: 0, kind: input, shape index: {}]   ;;  %s2200_s1 = inlined_call_operand.vmem [shape: bf16[512,32], index: 1, kind: input, shape index: {}]   ;;  %s2201_s2 = inlined_call_operand.vmem [shape: f32[512,16], index: 2, kind: input, shape index: {}]   ;;  %s2202_s3 = inlined_call_operand.vmem [shape: f32[512,16], index: 3, kind: output, shape index: {0}]   ;;  %s2203_s4 = inlined_call_operand.vmem [shape: f32[512,16], index: 4, kind: output, shape index: {1}]   ;;  %s2204_s5 = inlined_call_operand.vmem [shape: bf16[512,16], index: 5, kind: output, shape index: {2}]  }
   0x1 LB: > { %s1334_s19 = sadd.s32 4294967295, %s1720_s18   ;;  %p1338_p0 = scmp.ge.s32.totalorder %s1720_s18, 1  ;;  %s1720_s18 = sphi %s1753_s18, %s16_s18  }
   0x2   : > { %p205_p1 = scmp.lt.s32.totalorder %s1720_s18, 5 }
   0x4   : > { %p206_p2 = pnand %p1338_p0, %p205_p1 }
   0x5   : > { %s1339_s21 = sshll.u32 (!%p206_p2), %s1334_s19, 4  ;;  %s1722_s24 = smov (!%p206_p2), 112  }
   0x6   : > { %209 = sbr.rel (%p206_p2) target bundleno = 432 (0x1b0), region = 32  ;;  %p250_p3 = scmp.lt.s32.totalorder (!%p206_p2), %s1339_s21, 63 }
   0xb   : > { %v1648_v0 = vld [vmem:[%s2200_s1 + $0x38] sm:$0xff]  ;;  %v1647_v4 = vld [vmem:[%s2200_s1 + $0x30] sm:$0xff]  ;;  %v1646_v8 = vld [vmem:[%s2200_s1 + $0x28] sm:$0xff]  ;;  %s2206_s21 = smov (!%p250_p3, %s1339_s21), 63  ;;  %vm924_vm0 = vcmask 130048   ;;  %vm1181_vm1 = vcmask 125952  }
   0xc   : > { %v1656_v1 = vld [vmem:[%s2200_s1 + $0x78] sm:$0xff]  ;;  %728 = vmatpush.bf16.msra.mxu0 %v1648_v0  ;;  %v1655_v5 = vld [vmem:[%s2200_s1 + $0x70] sm:$0xff]  ;;  %v1654_v9 = vld [vmem:[%s2200_s1 + $0x68] sm:$0xff]  ;;  %s1608_s23 = sshll.u32 %s2206_s21, 4  ;;  %s1930_s17 = sshll.u32 %s2206_s21, 3 }
   0xd   : > { %v1664_v2 = vld [vmem:[%s2200_s1 + $0xb8] sm:$0xff]  ;;  %777 = vmatpush.bf16.msra.mxu1 %v1656_v1  ;;  %v1663_v6 = vld [vmem:[%s2200_s1 + $0xb0] sm:$0xff]  ;;  %v1662_v10 = vld [vmem:[%s2200_s1 + $0xa8] sm:$0xff]  ;;  %s1845_s19 = scalar_lea.vmem %s2199_s0, %s1608_s23  ;;  %s1936_s23 = scalar_lea.vmem %s2202_s3, %s1930_s17 }
   0xe   : > { %v1672_v3 = vld [vmem:[%s2200_s1 + $0xf8] sm:$0xff]  ;;  %826 = vmatpush.bf16.msra.mxu2 %v1664_v2  ;;  %v1671_v7 = vld [vmem:[%s2200_s1 + $0xf0] sm:$0xff]  ;;  %v1670_v11 = vld [vmem:[%s2200_s1 + $0xe8] sm:$0xff]  ;;  %s2059_s27 = scalar_lea.vmem %s2201_s2, %s1930_s17  ;;  %s1349_s28 = sshll.u32 %s2206_s21, 2 }
   0xf   : > { %875 = vmatpush.bf16.msra.mxu3 %v1672_v3  ;;  %v1645_v12 = vld [vmem:[%s2200_s1 + $0x20] sm:$0xff]  ;;  %v1644_v16 = vld [vmem:[%s2200_s1 + $0x18] sm:$0xff]  ;;  %v1643_v20 = vld [vmem:[%s2200_s1 + $0x10] sm:$0xff]  ;;  %s2079_s30 = scalar_lea.vmem %s2204_s5, %s1349_s28  ;;  %s2088_s7 = scalar_lea.vmem %s2203_s4, %s1930_s17 }
  0x10   : > { %729 = vmatpush.bf16.msra.mxu0 %v1647_v4  ;;  %v1653_v13 = vld [vmem:[%s2200_s1 + $0x60] sm:$0xff]  ;;  %v1652_v17 = vld [vmem:[%s2200_s1 + $0x58] sm:$0xff]  ;;  %v1651_v21 = vld [vmem:[%s2200_s1 + $0x50] sm:$0xff] }
  0x11   : > { %778 = vmatpush.bf16.msra.mxu1 %v1655_v5  ;;  %v1661_v14 = vld [vmem:[%s2200_s1 + $0xa0] sm:$0xff]  ;;  %v1660_v18 = vld [vmem:[%s2200_s1 + $0x98] sm:$0xff]  ;;  %v1659_v22 = vld [vmem:[%s2200_s1 + $0x90] sm:$0xff] }
  0x12   : > { %827 = vmatpush.bf16.msra.mxu2 %v1663_v6  ;;  %v1669_v15 = vld [vmem:[%s2200_s1 + $0xe0] sm:$0xff]  ;;  %v1668_v19 = vld [vmem:[%s2200_s1 + $0xd8] sm:$0xff]  ;;  %v1667_v23 = vld [vmem:[%s2200_s1 + $0xd0] sm:$0xff] }
  0x13   : > { %876 = vmatpush.bf16.msra.mxu3 %v1671_v7  ;;  %v1642_v24 = vld [vmem:[%s2200_s1 + $0x8] sm:$0xff]  ;;  %v1641_v28 = vld [vmem:[%s2200_s1] sm:$0xff]  ;;  %v1611_v33 = vld [vmem:[%s1845_s19 + $0xc] sm:$0xf0] }
  0x14   : > { %730 = vmatpush.bf16.msra.mxu0 %v1646_v8  ;;  %v1650_v25 = vld [vmem:[%s2200_s1 + $0x48] sm:$0xff]  ;;  %v1649_v29 = vld [vmem:[%s2200_s1 + $0x40] sm:$0xff]  ;;  %v1354_v35 = vld [vmem:[%s1845_s19 + $0x10] sm:$0xf0] }
  0x15   : > { %779 = vmatpush.bf16.msra.mxu1 %v1654_v9  ;;  %v1658_v26 = vld [vmem:[%s2200_s1 + $0x88] sm:$0xff]  ;;  %v1657_v30 = vld [vmem:[%s2200_s1 + $0x80] sm:$0xff]  ;;  %v1612_v37 = vld [vmem:[%s1845_s19 + $0x14] sm:$0xf0] }
  0x16   : > { %828 = vmatpush.bf16.msra.mxu2 %v1662_v10  ;;  %v1666_v27 = vld [vmem:[%s2200_s1 + $0xc8] sm:$0xff]  ;;  %v1665_v31 = vld [vmem:[%s2200_s1 + $0xc0] sm:$0xff]  ;;  %v1362_v39 = vld [vmem:[%s1845_s19 + $0x18] sm:$0xf0] }
  0x17   : > { %877 = vmatpush.bf16.msra.mxu3 %v1670_v11  ;;  %v1352_v32 = vld [vmem:[%s1845_s19] sm:$0xf]  ;;  %v1609_v34 = vld [vmem:[%s1845_s19 + $0x4] sm:$0xf]  ;;  %v1360_v36 = vld [vmem:[%s1845_s19 + $0x8] sm:$0xf] }
  0x18   : > { %731 = vmatpush.bf16.msra.mxu0 %v1645_v12  ;;  %v1610_v38 = vld [vmem:[%s1845_s19 + $0xc] sm:$0xf]  ;;  %v1353_v40 = vor.u32 %v1611_v33, %v1352_v32  ;;  %v1357_v41 = vor.u32 %v1609_v34, %v1354_v35  ;;  %v1361_v42 = vor.u32 %v1612_v37, %v1360_v36  ;;  %v1368_v44 = vld [vmem:[%s1845_s19 + $0x20] sm:$0xf]  ;;  %v1615_v45 = vld [vmem:[%s1845_s19 + $0x2c] sm:$0xf0] }
  0x19   : > { %780 = vmatpush.bf16.msra.mxu1 %v1653_v13  ;;  %v1365_v43 = vor.u32 %v1610_v38, %v1362_v39  ;;  %v1613_v46 = vld [vmem:[%s1845_s19 + $0x24] sm:$0xf]  ;;  %v1370_v47 = vld [vmem:[%s1845_s19 + $0x30] sm:$0xf0]  ;;  %v1376_v48 = vld [vmem:[%s1845_s19 + $0x28] sm:$0xf]  ;;  %v1369_v52 = vor.u32 %v1615_v45, %v1368_v44 }
  0x1a   : > { %829 = vmatpush.bf16.msra.mxu2 %v1661_v14  ;;  %v1616_v49 = vld [vmem:[%s1845_s19 + $0x34] sm:$0xf0]  ;;  %v1614_v50 = vld [vmem:[%s1845_s19 + $0x2c] sm:$0xf]  ;;  %v1378_v51 = vld [vmem:[%s1845_s19 + $0x38] sm:$0xf0]  ;;  %v1373_v53 = vor.u32 %v1613_v46, %v1370_v47 }
  0x1b   : > { %878 = vmatpush.bf16.msra.mxu3 %v1669_v15  ;;  %v1377_v54 = vor.u32 %v1616_v49, %v1376_v48  ;;  %v1381_v55 = vor.u32 %v1614_v50, %v1378_v51  ;;  %v1384_v56 = vld [vmem:[%s1845_s19 + $0x40] sm:$0xf]  ;;  %v1619_v57 = vld [vmem:[%s1845_s19 + $0x4c] sm:$0xf0]  ;;  %v1617_v58 = vld [vmem:[%s1845_s19 + $0x44] sm:$0xf] }
  0x1c   : > { %732 = vmatpush.bf16.msra.mxu0 %v1644_v16  ;;  %v1386_v59 = vld [vmem:[%s1845_s19 + $0x50] sm:$0xf0]  ;;  %v1392_v60 = vld [vmem:[%s1845_s19 + $0x48] sm:$0xf]  ;;  %v1620_v61 = vld [vmem:[%s1845_s19 + $0x54] sm:$0xf0]  ;;  %v1385_v0 = vor.u32 %v1619_v57, %v1384_v56 }
  0x1d   : > { %781 = vmatpush.bf16.msra.mxu1 %v1652_v17  ;;  %v1618_v62 = vld [vmem:[%s1845_s19 + $0x4c] sm:$0xf]  ;;  %v1394_v63 = vld [vmem:[%s1845_s19 + $0x58] sm:$0xf0]  ;;  %v1389_v1 = vor.u32 %v1617_v58, %v1386_v59  ;;  %v1393_v2 = vor.u32 %v1620_v61, %v1392_v60  ;;  %v1400_v4 = vld [vmem:[%s1845_s19 + $0x60] sm:$0xf] }
  0x1e   : > { %830 = vmatpush.bf16.msra.mxu2 %v1660_v18  ;;  %v1397_v3 = vor.u32 %v1618_v62, %v1394_v63  ;;  %v1623_v5 = vld [vmem:[%s1845_s19 + $0x6c] sm:$0xf0]  ;;  %v1621_v6 = vld [vmem:[%s1845_s19 + $0x64] sm:$0xf]  ;;  %v1402_v7 = vld [vmem:[%s1845_s19 + $0x70] sm:$0xf0] }
  0x1f   : > { %879 = vmatpush.bf16.msra.mxu3 %v1668_v19  ;;  %v1408_v8 = vld [vmem:[%s1845_s19 + $0x68] sm:$0xf]  ;;  %v1624_v9 = vld [vmem:[%s1845_s19 + $0x74] sm:$0xf0]  ;;  %v1622_v10 = vld [vmem:[%s1845_s19 + $0x6c] sm:$0xf]  ;;  %v1401_v12 = vor.u32 %v1623_v5, %v1400_v4  ;;  %v1405_v13 = vor.u32 %v1621_v6, %v1402_v7 }
  0x20   : > { %733 = vmatpush.bf16.msra.mxu0 %v1643_v20  ;;  %v1410_v11 = vld [vmem:[%s1845_s19 + $0x78] sm:$0xf0]  ;;  %v1409_v14 = vor.u32 %v1624_v9, %v1408_v8  ;;  %v1416_v16 = vld [vmem:[%s1845_s19 + $0x80] sm:$0xf]  ;;  %v1627_v17 = vld [vmem:[%s1845_s19 + $0x8c] sm:$0xf0] }
  0x21   : > { %782 = vmatpush.bf16.msra.mxu1 %v1651_v21  ;;  %v1413_v15 = vor.u32 %v1622_v10, %v1410_v11  ;;  %v1625_v18 = vld [vmem:[%s1845_s19 + $0x84] sm:$0xf]  ;;  %v1418_v19 = vld [vmem:[%s1845_s19 + $0x90] sm:$0xf0]  ;;  %v1424_v20 = vld [vmem:[%s1845_s19 + $0x88] sm:$0xf] }
  0x22   : > { %831 = vmatpush.bf16.msra.mxu2 %v1659_v22  ;;  %v1628_v21 = vld [vmem:[%s1845_s19 + $0x94] sm:$0xf0]  ;;  %v1626_v22 = vld [vmem:[%s1845_s19 + $0x8c] sm:$0xf]  ;;  %v1440_v32 = vld [vmem:[%s1845_s19 + $0xa8] sm:$0xf] }
  0x23   : > { %880 = vmatpush.bf16.msra.mxu3 %v1667_v23  ;;  %v1426_v23 = vld [vmem:[%s1845_s19 + $0x98] sm:$0xf0]  ;;  %v1632_v33 = vld [vmem:[%s1845_s19 + $0xb4] sm:$0xf0]  ;;  %v1630_v34 = vld [vmem:[%s1845_s19 + $0xac] sm:$0xf] }
  0x24   : > { %734 = vmatpush.bf16.msra.mxu0 %v1642_v24  ;;  %v1417_v24 = vor.u32 %v1627_v17, %v1416_v16  ;;  %v1442_v35 = vld [vmem:[%s1845_s19 + $0xb8] sm:$0xf0]  ;;  %v1441_v38 = vor.u32 %v1632_v33, %v1440_v32  ;;  %v1456_v44 = vld [vmem:[%s1845_s19 + $0xc8] sm:$0xf]  ;;  %v1636_v45 = vld [vmem:[%s1845_s19 + $0xd4] sm:$0xf0] }
  0x25   : > { %783 = vmatpush.bf16.msra.mxu1 %v1650_v25  ;;  %v1421_v25 = vor.u32 %v1625_v18, %v1418_v19  ;;  %v1445_v39 = vor.u32 %v1630_v34, %v1442_v35  ;;  %v1634_v46 = vld [vmem:[%s1845_s19 + $0xcc] sm:$0xf]  ;;  %v1458_v47 = vld [vmem:[%s1845_s19 + $0xd8] sm:$0xf0]  ;;  %v1457_v50 = vor.u32 %v1636_v45, %v1456_v44  ;;  %v1472_v56 = vld [vmem:[%s1845_s19 + $0xe8] sm:$0xf] }
  0x26   : > { %832 = vmatpush.bf16.msra.mxu2 %v1658_v26  ;;  %v1425_v26 = vor.u32 %v1628_v21, %v1424_v20  ;;  %v1461_v51 = vor.u32 %v1634_v46, %v1458_v47  ;;  %v1640_v57 = vld [vmem:[%s1845_s19 + $0xf4] sm:$0xf0]  ;;  %v1638_v58 = vld [vmem:[%s1845_s19 + $0xec] sm:$0xf]  ;;  %v1474_v59 = vld [vmem:[%s1845_s19 + $0xf8] sm:$0xf0] }
  0x27   : > { %881 = vmatpush.bf16.msra.mxu3 %v1666_v27  ;;  %v1429_v27 = vor.u32 %v1626_v22, %v1426_v23  ;;  %v1473_v62 = vor.u32 %v1640_v57, %v1472_v56  ;;  %v1477_v63 = vor.u32 %v1638_v58, %v1474_v59 }
  0x28   : > { %735 = vmatpush.bf16.msra.mxu0 %v1641_v28  ;;  %v1432_v28 = vld [vmem:[%s1845_s19 + $0xa0] sm:$0xf] }
  0x29   : > { %784 = vmatpush.bf16.msra.mxu1 %v1649_v29  ;;  %v1631_v29 = vld [vmem:[%s1845_s19 + $0xac] sm:$0xf0] }
  0x2a   : > { %833 = vmatpush.bf16.msra.mxu2 %v1657_v30  ;;  %v1629_v30 = vld [vmem:[%s1845_s19 + $0xa4] sm:$0xf]  ;;  %v1433_v36 = vor.u32 %v1631_v29, %v1432_v28 }
  0x2b   : > { %882 = vmatpush.bf16.msra.mxu3 %v1665_v31  ;;  %736 = vmatmul.bf16.vlgmr.msra.gmra.mxu0 %v1353_v40  ;;  %v1434_v31 = vld [vmem:[%s1845_s19 + $0xb0] sm:$0xf0]  ;;  %v1448_v40 = vld [vmem:[%s1845_s19 + $0xc0] sm:$0xf] }
  0x2c   : > { %785 = vmatmul.bf16.vlgmr.msra.gmra.mxu1 %v1357_v41  ;;  %v1437_v37 = vor.u32 %v1629_v30, %v1434_v31  ;;  %v1635_v41 = vld [vmem:[%s1845_s19 + $0xcc] sm:$0xf0] }
  0x2d   : > { %834 = vmatmul.bf16.vlgmr.msra.gmra.mxu2 %v1361_v42  ;;  %v1633_v42 = vld [vmem:[%s1845_s19 + $0xc4] sm:$0xf]  ;;  %v1449_v48 = vor.u32 %v1635_v41, %v1448_v40 }
  0x2e   : > { %883 = vmatmul.bf16.vlgmr.msra.gmra.mxu3 %v1365_v43  ;;  %v1450_v43 = vld [vmem:[%s1845_s19 + $0xd0] sm:$0xf0] }
  0x2f   : > { %v1453_v49 = vor.u32 %v1633_v42, %v1450_v43 }
  0x3b   : > { %741 = vmatmul.bf16.gmra.mxu0 %v1369_v52  ;;  %v1464_v52 = vld [vmem:[%s1845_s19 + $0xe0] sm:$0xf] }
  0x3c   : > { %790 = vmatmul.bf16.gmra.mxu1 %v1373_v53  ;;  %v1639_v53 = vld [vmem:[%s1845_s19 + $0xec] sm:$0xf0] }
  0x3d   : > { %839 = vmatmul.bf16.gmra.mxu2 %v1377_v54  ;;  %v1637_v54 = vld [vmem:[%s1845_s19 + $0xe4] sm:$0xf]  ;;  %v1465_v60 = vor.u32 %v1639_v53, %v1464_v52 }
  0x3e   : > { %888 = vmatmul.bf16.gmra.mxu3 %v1381_v55  ;;  %v1466_v55 = vld [vmem:[%s1845_s19 + $0xf0] sm:$0xf0] }
  0x3f   : > { %v1469_v61 = vor.u32 %v1637_v54, %v1466_v55 }
  0x4b   : > { %746 = vmatmul.bf16.gmra.mxu0 %v1385_v0 }
  0x4c   : > { %795 = vmatmul.bf16.gmra.mxu1 %v1389_v1 }
  0x4d   : > { %844 = vmatmul.bf16.gmra.mxu2 %v1393_v2 }
  0x4e   : > { %893 = vmatmul.bf16.gmra.mxu3 %v1397_v3 }
  0x5b   : > { %751 = vmatmul.bf16.gmra.mxu0 %v1401_v12 }
  0x5c   : > { %800 = vmatmul.bf16.gmra.mxu1 %v1405_v13 }
  0x5d   : > { %849 = vmatmul.bf16.gmra.mxu2 %v1409_v14 }
  0x5e   : > { %898 = vmatmul.bf16.gmra.mxu3 %v1413_v15 }
  0x6b   : > { %756 = vmatmul.bf16.gmra.mxu0 %v1417_v24 }
  0x6c   : > { %805 = vmatmul.bf16.gmra.mxu1 %v1421_v25 }
  0x6d   : > { %854 = vmatmul.bf16.gmra.mxu2 %v1425_v26 }
  0x6e   : > { %903 = vmatmul.bf16.gmra.mxu3 %v1429_v27 }
  0x7b   : > { %761 = vmatmul.bf16.gmra.mxu0 %v1433_v36 }
  0x7c   : > { %810 = vmatmul.bf16.gmra.mxu1 %v1437_v37 }
  0x7d   : > { %859 = vmatmul.bf16.gmra.mxu2 %v1441_v38 }
  0x7e   : > { %908 = vmatmul.bf16.gmra.mxu3 %v1445_v39 }
  0x8b   : > { %766 = vmatmul.bf16.gmra.mxu0 %v1449_v48 }
  0x8c   : > { %815 = vmatmul.bf16.gmra.mxu1 %v1453_v49 }
  0x8d   : > { %864 = vmatmul.bf16.gmra.mxu2 %v1457_v50 }
  0x8e   : > { %913 = vmatmul.bf16.gmra.mxu3 %v1461_v51 }
  0x9b   : > { %771 = vmatmul.bf16.gmra.mxu0 %v1465_v60 }
  0x9c   : > { %820 = vmatmul.bf16.gmra.mxu1 %v1469_v61 }
  0x9d   : > { %869 = vmatmul.bf16.gmra.mxu2 %v1473_v62 }
  0x9e   : > { %918 = vmatmul.bf16.gmra.mxu3 %v1477_v63 }
  0xa8   : > { %v737_v0 = vpop.f32.mrf.mxu0 }
  0xa9   : > { %v786_v1 = vpop.f32.mrf.mxu1 }
  0xaa   : > { %v787_v2 = vadd.f32 %v786_v1, %v737_v0 }
  0xb0   : > { %v835_v3 = vpop.f32.mrf.mxu2  ;;  %v739_v6 = vpop.f32.mrf.mxu0 }
  0xb1   : > { %v884_v4 = vpop.f32.mrf.mxu3  ;;  %v836_v5 = vadd.f32 %v835_v3, %v787_v2  ;;  %v788_v7 = vpop.f32.mrf.mxu1 }
  0xb2   : > { %v789_v10 = vadd.f32 %v788_v7, %v739_v6 }
  0xb3   : > { %v1938_v8 = vadd.f32 %v884_v4, %v836_v5 }
  0xb5   : > { %925 = vst.msk [vmem:[%s1936_s23] sm:$0xff] %vm924_vm0, %v1938_v8  ;;  %957 = vrot.lane.b32.xlu0 %v1938_v8, %s1722_s24  ;;  %v1037_v9 = vmul.f32 1.442695, %v1938_v8 }
  0xb7   : > { %1682 = vpow2.f32 %v1037_v9 }
  0xb8   : > { %v837_v11 = vpop.f32.mrf.mxu2  ;;  %v742_v14 = vpop.f32.mrf.mxu0 }
  0xb9   : > { %v886_v12 = vpop.f32.mrf.mxu3  ;;  %v838_v13 = vadd.f32 %v837_v11, %v789_v10  ;;  %v791_v15 = vpop.f32.mrf.mxu1 }
  0xba   : > { %v792_v18 = vadd.f32 %v791_v15, %v742_v14 }
  0xbb   : > { %v1946_v16 = vadd.f32 %v886_v12, %v838_v13 }
  0xbd   : > { %v1683_v17 = vpop.eup %1682  ;;  %926 = vst.msk [vmem:[%s1936_s23 + $0x8] sm:$0xff] %vm924_vm0, %v1946_v16  ;;  %959 = vrot.lane.b32.xlu0 %v1946_v16, %s1722_s24  ;;  %v1039_v19 = vmul.f32 1.442695, %v1946_v16 }
  0xbe   : > { %1085 = vrot.lane.b32.xlu1 %v1683_v17, %s1722_s24 }
  0xbf   : > { %1684 = vpow2.f32 %v1039_v19 }
  0xc0   : > { %v840_v20 = vpop.f32.mrf.mxu2  ;;  %v744_v23 = vpop.f32.mrf.mxu0 }
  0xc1   : > { %v889_v21 = vpop.f32.mrf.mxu3  ;;  %v841_v22 = vadd.f32 %v840_v20, %v792_v18  ;;  %v793_v24 = vpop.f32.mrf.mxu1 }
  0xc2   : > { %v794_v28 = vadd.f32 %v793_v24, %v744_v23 }
  0xc3   : > { %v1955_v25 = vadd.f32 %v889_v21, %v841_v22 }
  0xc5   : > { %v1685_v26 = vpop.eup %1684  ;;  %927 = vst.msk [vmem:[%s1936_s23 + $0x10] sm:$0xff] %vm924_vm0, %v1955_v25  ;;  %v1041_v27 = vmul.f32 1.442695, %v1955_v25 }
  0xc6   : > { %1087 = vrot.lane.b32.xlu2 %v1685_v26, %s1722_s24  ;;  %961 = vrot.lane.b32.xlu1 %v1955_v25, %s1722_s24 }
  0xc7   : > { %1686 = vpow2.f32 %v1041_v27 }
  0xc8   : > { %v842_v29 = vpop.f32.mrf.mxu2  ;;  %v747_v32 = vpop.f32.mrf.mxu0 }
  0xc9   : > { %v891_v30 = vpop.f32.mrf.mxu3  ;;  %v843_v31 = vadd.f32 %v842_v29, %v794_v28  ;;  %v796_v33 = vpop.f32.mrf.mxu1 }
  0xca   : > { %v797_v37 = vadd.f32 %v796_v33, %v747_v32 }
  0xcb   : > { %v1964_v34 = vadd.f32 %v891_v30, %v843_v31 }
  0xcd   : > { %v1687_v35 = vpop.eup %1686  ;;  %928 = vst.msk [vmem:[%s1936_s23 + $0x18] sm:$0xff] %vm924_vm0, %v1964_v34  ;;  %v1043_v36 = vmul.f32 1.442695, %v1964_v34 }
  0xce   : > { %1089 = vrot.lane.b32.xlu0 %v1687_v35, %s1722_s24  ;;  %963 = vrot.lane.b32.xlu1 %v1964_v34, %s1722_s24 }
  0xcf   : > { %1688 = vpow2.f32 %v1043_v36 }
  0xd0   : > { %v845_v38 = vpop.f32.mrf.mxu2  ;;  %v749_v41 = vpop.f32.mrf.mxu0 }
  0xd1   : > { %v894_v39 = vpop.f32.mrf.mxu3  ;;  %v846_v40 = vadd.f32 %v845_v38, %v797_v37  ;;  %v798_v42 = vpop.f32.mrf.mxu1 }
  0xd2   : > { %v799_v45 = vadd.f32 %v798_v42, %v749_v41 }
  0xd3   : > { %v1973_v43 = vadd.f32 %v894_v39, %v846_v40 }
  0xd5   : > { %v1689_v44 = vpop.eup %1688  ;;  %929 = vst.msk [vmem:[%s1936_s23 + $0x20] sm:$0xff] %vm924_vm0, %v1973_v43  ;;  %965 = vrot.lane.b32.xlu2 %v1973_v43, %s1722_s24  ;;  %v1045_v51 = vmul.f32 1.442695, %v1973_v43 }
  0xd6   : > { %1091 = vrot.lane.b32.xlu1 %v1689_v44, %s1722_s24 }
  0xd7   : > { %1690 = vpow2.f32 %v1045_v51 }
  0xd8   : > { %v847_v46 = vpop.f32.mrf.mxu2  ;;  %v752_v49 = vpop.f32.mrf.mxu0 }
  0xd9   : > { %v896_v47 = vpop.f32.mrf.mxu3  ;;  %v848_v48 = vadd.f32 %v847_v46, %v799_v45  ;;  %v801_v50 = vpop.f32.mrf.mxu1 }
  0xda   : > { %v802_v53 = vadd.f32 %v801_v50, %v752_v49 }
  0xdb   : > { %v1982_v52 = vadd.f32 %v896_v47, %v848_v48 }
  0xdd   : > { %930 = vst.msk [vmem:[%s1936_s23 + $0x28] sm:$0xff] %vm924_vm0, %v1982_v52  ;;  %967 = vrot.lane.b32.xlu2 %v1982_v52, %s1722_s24  ;;  %v1047_v59 = vmul.f32 1.442695, %v1982_v52  ;;  %v1691_v61 = vpop.eup %1690 }
  0xdf   : > { %1692 = vpow2.f32 %v1047_v59 }
  0xe0   : > { %v850_v54 = vpop.f32.mrf.mxu2  ;;  %v754_v57 = vpop.f32.mrf.mxu0 }
  0xe1   : > { %v899_v55 = vpop.f32.mrf.mxu3  ;;  %v851_v56 = vadd.f32 %v850_v54, %v802_v53  ;;  %v803_v58 = vpop.f32.mrf.mxu1 }
  0xe2   : > { %v804_v62 = vadd.f32 %v803_v58, %v754_v57 }
  0xe3   : > { %v1990_v60 = vadd.f32 %v899_v55, %v851_v56 }
  0xe5   : > { %931 = vst.msk [vmem:[%s1936_s23 + $0x30] sm:$0xff] %vm924_vm0, %v1990_v60  ;;  %1093 = vrot.lane.b32.xlu2 %v1691_v61, %s1722_s24  ;;  %969 = vrot.lane.b32.xlu0 %v1990_v60, %s1722_s24  ;;  %v1049_v4 = vmul.f32 1.442695, %v1990_v60  ;;  %v1693_v6 = vpop.eup %1692 }
  0xe7   : > { %1694 = vpow2.f32 %v1049_v4 }
  0xe8   : > { %v852_v63 = vpop.f32.mrf.mxu2  ;;  %v757_v2 = vpop.f32.mrf.mxu0 }
  0xe9   : > { %v901_v0 = vpop.f32.mrf.mxu3  ;;  %v853_v1 = vadd.f32 %v852_v63, %v804_v62  ;;  %v806_v3 = vpop.f32.mrf.mxu1 }
  0xea   : > { %v807_v7 = vadd.f32 %v806_v3, %v757_v2 }
  0xeb   : > { %v1999_v5 = vadd.f32 %v901_v0, %v853_v1 }
  0xed   : > { %932 = vst.msk [vmem:[%s1936_s23 + $0x38] sm:$0xff] %vm924_vm0, %v1999_v5  ;;  %1095 = vrot.lane.b32.xlu0 %v1693_v6, %s1722_s24  ;;  %971 = vrot.lane.b32.xlu1 %v1999_v5, %s1722_s24  ;;  %v1051_v14 = vmul.f32 1.442695, %v1999_v5  ;;  %v1695_v17 = vpop.eup %1694  ;;  %v1022_v6 = vld [vmem:[%s2059_s27 + $0x8] sm:$0xff] }
  0xef   : > { %1696 = vpow2.f32 %v1051_v14 }
  0xf0   : > { %v855_v9 = vpop.f32.mrf.mxu2  ;;  %v759_v12 = vpop.f32.mrf.mxu0 }
  0xf1   : > { %v904_v10 = vpop.f32.mrf.mxu3  ;;  %v856_v11 = vadd.f32 %v855_v9, %v807_v7  ;;  %v808_v13 = vpop.f32.mrf.mxu1 }
  0xf2   : > { %v809_v18 = vadd.f32 %v808_v13, %v759_v12 }
  0xf3   : > { %v2008_v15 = vadd.f32 %v904_v10, %v856_v11 }
  0xf5   : > { %933 = vst.msk [vmem:[%s1936_s23 + $0x40] sm:$0xff] %vm924_vm0, %v2008_v15  ;;  %973 = vrot.lane.b32.xlu2 %v2008_v15, %s1722_s24  ;;  %1097 = vrot.lane.b32.xlu1 %v1695_v17, %s1722_s24  ;;  %v1053_v24 = vmul.f32 1.442695, %v2008_v15  ;;  %v1697_v27 = vpop.eup %1696 }
  0xf7   : > { %1698 = vpow2.f32 %v1053_v24 }
  0xf8   : > { %v857_v19 = vpop.f32.mrf.mxu2  ;;  %v762_v22 = vpop.f32.mrf.mxu0 }
  0xf9   : > { %v906_v20 = vpop.f32.mrf.mxu3  ;;  %v858_v21 = vadd.f32 %v857_v19, %v809_v18  ;;  %v811_v23 = vpop.f32.mrf.mxu1 }
  0xfa   : > { %v812_v28 = vadd.f32 %v811_v23, %v762_v22 }
  0xfb   : > { %v2017_v26 = vadd.f32 %v906_v20, %v858_v21 }
  0xfd   : > { %934 = vst.msk [vmem:[%s1936_s23 + $0x48] sm:$0xff] %vm924_vm0, %v2017_v26  ;;  %1099 = vrot.lane.b32.xlu2 %v1697_v27, %s1722_s24  ;;  %975 = vrot.lane.b32.xlu0 %v2017_v26, %s1722_s24  ;;  %v1055_v35 = vmul.f32 1.442695, %v2017_v26  ;;  %v1699_v37 = vpop.eup %1698 }
  0xff   : > { %1700 = vpow2.f32 %v1055_v35 }
 0x100   : > { %v860_v29 = vpop.f32.mrf.mxu2  ;;  %v764_v32 = vpop.f32.mrf.mxu0 }
 0x101   : > { %v909_v30 = vpop.f32.mrf.mxu3  ;;  %v861_v31 = vadd.f32 %v860_v29, %v812_v28  ;;  %v813_v33 = vpop.f32.mrf.mxu1 }
 0x102   : > { %v814_v38 = vadd.f32 %v813_v33, %v764_v32  ;;  %v1021_v32 = vld [vmem:[%s2059_s27] sm:$0xff] }
 0x103   : > { %v2026_v36 = vadd.f32 %v909_v30, %v861_v31 }
 0x105   : > { %935 = vst.msk [vmem:[%s1936_s23 + $0x50] sm:$0xff] %vm924_vm0, %v2026_v36  ;;  %1101 = vrot.lane.b32.xlu0 %v1699_v37, %s1722_s24  ;;  %977 = vrot.lane.b32.xlu1 %v2026_v36, %s1722_s24  ;;  %v1057_v45 = vmul.f32 1.442695, %v2026_v36  ;;  %v1701_v47 = vpop.eup %1700 }
 0x107   : > { %1702 = vpow2.f32 %v1057_v45 }
 0x108   : > { %v862_v39 = vpop.f32.mrf.mxu2  ;;  %v767_v42 = vpop.f32.mrf.mxu0 }
 0x109   : > { %v911_v40 = vpop.f32.mrf.mxu3  ;;  %v863_v41 = vadd.f32 %v862_v39, %v814_v38  ;;  %v816_v44 = vpop.f32.mrf.mxu1 }
 0x10a   : > { %v817_v48 = vadd.f32 %v816_v44, %v767_v42 }
 0x10b   : > { %v2035_v46 = vadd.f32 %v911_v40, %v863_v41 }
 0x10d   : > { %936 = vst.msk [vmem:[%s1936_s23 + $0x58] sm:$0xff] %vm924_vm0, %v2035_v46  ;;  %979 = vrot.lane.b32.xlu2 %v2035_v46, %s1722_s24  ;;  %1103 = vrot.lane.b32.xlu1 %v1701_v47, %s1722_s24  ;;  %v1059_v55 = vmul.f32 1.442695, %v2035_v46  ;;  %v1703_v57 = vpop.eup %1702  ;;  %v1023_v47 = vld [vmem:[%s2059_s27 + $0x10] sm:$0xff] }
 0x10f   : > { %1704 = vpow2.f32 %v1059_v55 }
 0x110   : > { %v865_v49 = vpop.f32.mrf.mxu2  ;;  %v769_v53 = vpop.f32.mrf.mxu0 }
 0x111   : > { %v914_v50 = vpop.f32.mrf.mxu3  ;;  %v866_v51 = vadd.f32 %v865_v49, %v817_v48  ;;  %v818_v54 = vpop.f32.mrf.mxu1 }
 0x112   : > { %v819_v58 = vadd.f32 %v818_v54, %v769_v53 }
 0x113   : > { %v2044_v56 = vadd.f32 %v914_v50, %v866_v51 }
 0x115   : > { %937 = vst.msk [vmem:[%s1936_s23 + $0x60] sm:$0xff] %vm924_vm0, %v2044_v56  ;;  %1105 = vrot.lane.b32.xlu2 %v1703_v57, %s1722_s24  ;;  %981 = vrot.lane.b32.xlu0 %v2044_v56, %s1722_s24  ;;  %v1061_v63 = vmul.f32 1.442695, %v2044_v56  ;;  %v1705_v3 = vpop.eup %1704 }
 0x117   : > { %1706 = vpow2.f32 %v1061_v63 }
 0x118   : > { %v867_v59 = vpop.f32.mrf.mxu2  ;;  %v772_v0 = vpop.f32.mrf.mxu0 }
 0x119   : > { %v916_v61 = vpop.f32.mrf.mxu3  ;;  %v868_v62 = vadd.f32 %v867_v59, %v819_v58  ;;  %v821_v1 = vpop.f32.mrf.mxu1  ;;  %v1024_v59 = vld [vmem:[%s2059_s27 + $0x18] sm:$0xff] }
 0x11a   : > { %v822_v4 = vadd.f32 %v821_v1, %v772_v0 }
 0x11b   : > { %v2053_v2 = vadd.f32 %v916_v61, %v868_v62 }
 0x11d   : > { %938 = vst.msk [vmem:[%s1936_s23 + $0x68] sm:$0xff] %vm924_vm0, %v2053_v2  ;;  %1107 = vrot.lane.b32.xlu0 %v1705_v3, %s1722_s24  ;;  %983 = vrot.lane.b32.xlu1 %v2053_v2, %s1722_s24  ;;  %v1063_v12 = vmul.f32 1.442695, %v2053_v2  ;;  %v1707_v17 = vpop.eup %1706 }
 0x11f   : > { %1708 = vpow2.f32 %v1063_v12 }
 0x120   : > { %v870_v7 = vpop.f32.mrf.mxu2  ;;  %v1088_v11 = vpop.permute.xlu2 %1087 }
 0x121   : > { %v919_v9 = vpop.f32.mrf.mxu3  ;;  %v871_v10 = vadd.f32 %v870_v7, %v822_v4  ;;  %v1134_v13 = vmul.f32 %v1088_v11, %v1022_v6  ;;  %v774_v19 = vpop.f32.mrf.mxu0 }
 0x122   : > { %v823_v20 = vpop.f32.mrf.mxu1 }
 0x123   : > { %v2070_v14 = vadd.f32 %v919_v9, %v871_v10  ;;  %v1150_v18 = vadd.f32 %v1134_v13, %v1946_v16  ;;  %v824_v21 = vadd.f32 %v823_v20, %v774_v19 }
 0x125   : > { %939 = vst.msk [vmem:[%s1936_s23 + $0x70] sm:$0xff] %vm924_vm0, %v2070_v14  ;;  %985 = vrot.lane.b32.xlu2 %v2070_v14, %s1722_s24  ;;  %1109 = vrot.lane.b32.xlu1 %v1707_v17, %s1722_s24  ;;  %v1166_v16 = vpack.c.bf16 %v1150_v18, %v1150_v18  ;;  %v1065_v27 = vmul.f32 1.442695, %v2070_v14  ;;  %v1709_v30 = vpop.eup %1708  ;;  %v1027_v17 = vld [vmem:[%s2059_s27 + $0x30] sm:$0xff] }
 0x127   : > { %v958_v22 = vpop.permute.xlu0 %957  ;;  %1183 = vst.msk [vmem:[%s2079_s30 + $0x4] sm:$0xf] %vm1181_vm1, %v1166_v16  ;;  %1710 = vpow2.f32 %v1065_v27 }
 0x128   : > { %v872_v23 = vpop.f32.mrf.mxu2  ;;  %1005 = vst.msk [vmem:[%s2088_s7] sm:$0xff] %vm924_vm0, %v958_v22 }
 0x129   : > { %v873_v24 = vadd.f32 %v872_v23, %v824_v21  ;;  %v921_v28 = vpop.f32.mrf.mxu3  ;;  %v1031_v21 = vld [vmem:[%s2059_s27 + $0x50] sm:$0xff] }
 0x12b   : > { %v2095_v29 = vadd.f32 %v921_v28, %v873_v24  ;;  %v1029_v28 = vld [vmem:[%s2059_s27 + $0x40] sm:$0xff] }
 0x12d   : > { %940 = vst.msk [vmem:[%s1936_s23 + $0x78] sm:$0xff] %vm924_vm0, %v2095_v29  ;;  %v1067_v31 = vmul.f32 1.442695, %v2095_v29  ;;  %1111 = vrot.lane.b32.xlu2 %v1709_v30, %s1722_s24  ;;  %987 = vrot.lane.b32.xlu0 %v2095_v29, %s1722_s24  ;;  %v1711_v40 = vpop.eup %1710 }
 0x12f   : > { %1712 = vpow2.f32 %v1067_v31  ;;  %v966_v33 = vpop.permute.xlu2 %965  ;;  %v960_v35 = vpop.permute.xlu0 %959 }
 0x130   : > { %1009 = vst.msk [vmem:[%s2088_s7 + $0x20] sm:$0xff] %vm924_vm0, %v966_v33  ;;  %v1086_v37 = vpop.permute.xlu1 %1085 }
 0x131   : > { %1006 = vst.msk [vmem:[%s2088_s7 + $0x8] sm:$0xff] %vm924_vm0, %v960_v35  ;;  %v1133_v38 = vmul.f32 %v1086_v37, %v1021_v32  ;;  %v1030_v35 = vld [vmem:[%s2059_s27 + $0x48] sm:$0xff] }
 0x133   : > { %v1149_v39 = vadd.f32 %v1133_v38, %v1938_v8  ;;  %v1025_v8 = vld [vmem:[%s2059_s27 + $0x20] sm:$0xff] }
 0x135   : > { %v1713_v41 = vpop.eup %1712  ;;  %v1165_v42 = vpack.c.bf16 %v1149_v39, %v1149_v39  ;;  %1113 = vrot.lane.b32.xlu0 %v1711_v40, %s1722_s24 }
 0x136   : > { %1115 = vrot.lane.b32.xlu1 %v1713_v41, %s1722_s24  ;;  %v1034_v41 = vld [vmem:[%s2059_s27 + $0x68] sm:$0xff] }
 0x137   : > { %1182 = vst.msk [vmem:[%s2079_s30] sm:$0xf] %vm1181_vm1, %v1165_v42  ;;  %v968_v44 = vpop.permute.xlu2 %967 }
 0x138   : > { %1010 = vst.msk [vmem:[%s2088_s7 + $0x28] sm:$0xff] %vm924_vm0, %v968_v44  ;;  %v962_v45 = vpop.permute.xlu1 %961 }
 0x139   : > { %1007 = vst.msk [vmem:[%s2088_s7 + $0x10] sm:$0xff] %vm924_vm0, %v962_v45 }
 0x13f   : > { %v1094_v48 = vpop.permute.xlu2 %1093 }
 0x140   : > { %v1137_v49 = vmul.f32 %v1094_v48, %v1025_v8  ;;  %v1090_v50 = vpop.permute.xlu0 %1089  ;;  %v964_v51 = vpop.permute.xlu1 %963 }
 0x141   : > { %v1135_v53 = vmul.f32 %v1090_v50, %v1023_v47  ;;  %1008 = vst.msk [vmem:[%s2088_s7 + $0x18] sm:$0xff] %vm924_vm0, %v964_v51  ;;  %v1032_v47 = vld [vmem:[%s2059_s27 + $0x58] sm:$0xff] }
 0x142   : > { %v1153_v54 = vadd.f32 %v1137_v49, %v1973_v43 }
 0x143   : > { %v1151_v55 = vadd.f32 %v1135_v53, %v1955_v25  ;;  %v1028_v25 = vld [vmem:[%s2059_s27 + $0x38] sm:$0xff]  ;;  %v1033_v53 = vld [vmem:[%s2059_s27 + $0x60] sm:$0xff] }
 0x144   : > { %v1169_v57 = vpack.c.bf16 %v1153_v54, %v1153_v54 }
 0x145   : > { %v1167_v58 = vpack.c.bf16 %v1151_v55, %v1151_v55 }
 0x146   : > { %1186 = vst.msk [vmem:[%s2079_s30 + $0x10] sm:$0xf] %vm1181_vm1, %v1169_v57 }
 0x147   : > { %1184 = vst.msk [vmem:[%s2079_s30 + $0x8] sm:$0xf] %vm1181_vm1, %v1167_v58 }
 0x148   : > { %v1092_v61 = vpop.permute.xlu1 %1091 }
 0x149   : > { %v1136_v62 = vmul.f32 %v1092_v61, %v1024_v59  ;;  %v1035_v59 = vld [vmem:[%s2059_s27 + $0x70] sm:$0xff]  ;;  %v1036_v61 = vld [vmem:[%s2059_s27 + $0x78] sm:$0xff] }
 0x14b   : > { %v1152_v63 = vadd.f32 %v1136_v62, %v1964_v34  ;;  %v1026_v34 = vld [vmem:[%s2059_s27 + $0x28] sm:$0xff] }
 0x14d   : > { %v1168_v0 = vpack.c.bf16 %v1152_v63, %v1152_v63 }
 0x14f   : > { %1185 = vst.msk [vmem:[%s2079_s30 + $0xc] sm:$0xf] %vm1181_vm1, %v1168_v0  ;;  %v974_v43 = vpop.permute.xlu2 %973 }
 0x150   : > { %1013 = vst.msk [vmem:[%s2088_s7 + $0x40] sm:$0xff] %vm924_vm0, %v974_v43 }
 0x157   : > { %v1100_v1 = vpop.permute.xlu2 %1099  ;;  %v970_v3 = vpop.permute.xlu0 %969 }
 0x158   : > { %v1140_v4 = vmul.f32 %v1100_v1, %v1028_v25  ;;  %1011 = vst.msk [vmem:[%s2088_s7 + $0x30] sm:$0xff] %vm924_vm0, %v970_v3 }
 0x15a   : > { %v1156_v6 = vadd.f32 %v1140_v4, %v1999_v5 }
 0x15c   : > { %v1172_v7 = vpack.c.bf16 %v1156_v6, %v1156_v6 }
 0x15e   : > { %1189 = vst.msk [vmem:[%s2079_s30 + $0x1c] sm:$0xf] %vm1181_vm1, %v1172_v7 }
 0x15f   : > { %v1096_v9 = vpop.permute.xlu0 %1095  ;;  %v972_v10 = vpop.permute.xlu1 %971 }
 0x160   : > { %v1138_v11 = vmul.f32 %v1096_v9, %v1026_v34  ;;  %1012 = vst.msk [vmem:[%s2088_s7 + $0x38] sm:$0xff] %vm924_vm0, %v972_v10 }
 0x162   : > { %v1154_v12 = vadd.f32 %v1138_v11, %v1982_v52 }
 0x164   : > { %v1170_v13 = vpack.c.bf16 %v1154_v12, %v1154_v12 }
 0x166   : > { %1187 = vst.msk [vmem:[%s2079_s30 + $0x14] sm:$0xf] %vm1181_vm1, %v1170_v13 }
 0x167   : > { %v980_v5 = vpop.permute.xlu2 %979  ;;  %v1098_v18 = vpop.permute.xlu1 %1097 }
 0x168   : > { %1016 = vst.msk [vmem:[%s2088_s7 + $0x58] sm:$0xff] %vm924_vm0, %v980_v5  ;;  %v1139_v19 = vmul.f32 %v1098_v18, %v1027_v17 }
 0x16a   : > { %v1155_v20 = vadd.f32 %v1139_v19, %v1990_v60 }
 0x16c   : > { %v1171_v16 = vpack.c.bf16 %v1155_v20, %v1155_v20 }
 0x16e   : > { %1188 = vst.msk [vmem:[%s2079_s30 + $0x18] sm:$0xf] %vm1181_vm1, %v1171_v16 }
 0x16f   : > { %v1106_v52 = vpop.permute.xlu2 %1105  ;;  %v976_v22 = vpop.permute.xlu0 %975 }
 0x170   : > { %v1143_v23 = vmul.f32 %v1106_v52, %v1031_v21  ;;  %1014 = vst.msk [vmem:[%s2088_s7 + $0x48] sm:$0xff] %vm924_vm0, %v976_v22 }
 0x172   : > { %v1159_v24 = vadd.f32 %v1143_v23, %v2026_v36 }
 0x174   : > { %v1175_v27 = vpack.c.bf16 %v1159_v24, %v1159_v24 }
 0x176   : > { %1192 = vst.msk [vmem:[%s2079_s30 + $0x28] sm:$0xf] %vm1181_vm1, %v1175_v27 }
 0x177   : > { %v1102_v60 = vpop.permute.xlu0 %1101  ;;  %v978_v30 = vpop.permute.xlu1 %977 }
 0x178   : > { %v1141_v31 = vmul.f32 %v1102_v60, %v1029_v28  ;;  %1015 = vst.msk [vmem:[%s2088_s7 + $0x50] sm:$0xff] %vm924_vm0, %v978_v30 }
 0x17a   : > { %v1157_v32 = vadd.f32 %v1141_v31, %v2008_v15 }
 0x17c   : > { %v1173_v33 = vpack.c.bf16 %v1157_v32, %v1157_v32 }
 0x17e   : > { %1190 = vst.msk [vmem:[%s2079_s30 + $0x20] sm:$0xf] %vm1181_vm1, %v1173_v33 }
 0x17f   : > { %v986_v36 = vpop.permute.xlu2 %985  ;;  %v1104_v37 = vpop.permute.xlu1 %1103 }
 0x180   : > { %1019 = vst.msk [vmem:[%s2088_s7 + $0x70] sm:$0xff] %vm924_vm0, %v986_v36  ;;  %v1142_v38 = vmul.f32 %v1104_v37, %v1030_v35 }
 0x182   : > { %v1158_v39 = vadd.f32 %v1142_v38, %v2017_v26 }
 0x184   : > { %v1174_v40 = vpack.c.bf16 %v1158_v39, %v1158_v39 }
 0x186   : > { %1191 = vst.msk [vmem:[%s2079_s30 + $0x24] sm:$0xf] %vm1181_vm1, %v1174_v40 }
 0x187   : > { %v1112_v15 = vpop.permute.xlu2 %1111  ;;  %v982_v42 = vpop.permute.xlu0 %981 }
 0x188   : > { %v1146_v44 = vmul.f32 %v1112_v15, %v1034_v41  ;;  %1017 = vst.msk [vmem:[%s2088_s7 + $0x60] sm:$0xff] %vm924_vm0, %v982_v42 }
 0x18a   : > { %v1162_v45 = vadd.f32 %v1146_v44, %v2053_v2 }
 0x18c   : > { %v1178_v8 = vpack.c.bf16 %v1162_v45, %v1162_v45 }
 0x18e   : > { %1195 = vst.msk [vmem:[%s2079_s30 + $0x34] sm:$0xf] %vm1181_vm1, %v1178_v8 }
 0x18f   : > { %v1108_v26 = vpop.permute.xlu0 %1107  ;;  %v984_v48 = vpop.permute.xlu1 %983 }
 0x190   : > { %v1144_v49 = vmul.f32 %v1108_v26, %v1032_v47  ;;  %1018 = vst.msk [vmem:[%s2088_s7 + $0x68] sm:$0xff] %vm924_vm0, %v984_v48 }
 0x192   : > { %v1160_v50 = vadd.f32 %v1144_v49, %v2035_v46 }
 0x194   : > { %v1176_v51 = vpack.c.bf16 %v1160_v50, %v1160_v50 }
 0x196   : > { %1193 = vst.msk [vmem:[%s2079_s30 + $0x2c] sm:$0xf] %vm1181_vm1, %v1176_v51 }
 0x197   : > { %v1110_v2 = vpop.permute.xlu1 %1109 }
 0x198   : > { %v1145_v54 = vmul.f32 %v1110_v2, %v1033_v53 }
 0x19a   : > { %v1161_v55 = vadd.f32 %v1145_v54, %v2044_v56 }
 0x19c   : > { %v1177_v57 = vpack.c.bf16 %v1161_v55, %v1161_v55 }
 0x19e   : > { %1194 = vst.msk [vmem:[%s2079_s30 + $0x30] sm:$0xf] %vm1181_vm1, %v1177_v57 }
 0x19f   : > { %v988_v58 = vpop.permute.xlu0 %987 }
 0x1a0   : > { %1020 = vst.msk [vmem:[%s2088_s7 + $0x78] sm:$0xff] %vm924_vm0, %v988_v58 }
 0x1a7   : > { %v1114_v62 = vpop.permute.xlu0 %1113 }
 0x1a8   : > { %v1147_v46 = vmul.f32 %v1114_v62, %v1035_v59  ;;  %v1116_v63 = vpop.permute.xlu1 %1115 }
 0x1a9   : > { %v1148_v0 = vmul.f32 %v1116_v63, %v1036_v61 }
 0x1aa   : > { %v1163_v43 = vadd.f32 %v1147_v46, %v2070_v14 }
 0x1ab   : > { %v1164_v25 = vadd.f32 %v1148_v0, %v2095_v29 }
 0x1ac   : > { %v1179_v1 = vpack.c.bf16 %v1163_v43, %v1163_v43 }
 0x1ad   : > { %v1180_v3 = vpack.c.bf16 %v1164_v25, %v1164_v25 }
 0x1ae   : > { %1196 = vst.msk [vmem:[%s2079_s30 + $0x38] sm:$0xf] %vm1181_vm1, %v1179_v1 }
 0x1af   : > { %1197 = vst.msk [vmem:[%s2079_s30 + $0x3c] sm:$0xf] %vm1181_vm1, %v1180_v3 }
 0x1b0 PF: > { %s16_s18 = sadd.s32 1, %s1720_s18  }
 0x1b1   : > { %p13_p4 = scmp.ge.s32.totalorder %s16_s18, 6  }
 0x1b3   :  { %15 = sbr.rel (!%p13_p4) target bundleno = 1 (0x1), region = 89 }

// kernel: _lambda_.7
= control target key start
LH: loop header
LB: loop body
LE: loop exit
PB: predicated region body
PF: predicated region fallthrough
CT: control target
= control target key end

     0   :  { %7 = vsyncpa [#allocation3], 0  ;;  %s1544_s0 = inlined_call_operand.vmem [shape: bf16[512,16], index: 0, kind: input, shape index: {}, may-alias: {0,1}]   ;;  %s1545_s1 = inlined_call_operand.vmem [shape: bf16[512,16], index: 1, kind: input, shape index: {}, may-alias: {0,1}]   ;;  %s1546_s2 = inlined_call_operand.hbm [shape: f32[512,512], index: 2, kind: output, shape index: {}]  }
   0x1   :  { %9 = vsyncpa [#allocation3 + $0x1], 0  ;;  %s1266_s9 = smov 0   ;;  %s1268_s10 = smov 0  }
   0x2   :  { %s1270_s11 = smov 0   ;;  %s1272_s12 = smov 0  }
   0x3   :  { %s1274_s13 = smov 0   ;;  %s1276_s14 = smov 0  }
   0x4   :  { %s1278_s15 = smov 0   ;;  %s1280_s16 = smov 0  }
   0x5 LB: > { %s852_s17 = sadd.s32 4294967295, %s1246_s16   ;;  %s853_s18 = sadd.s32 4294967294, %s1246_s16   ;;  %s1246_s16 = sphi %s1280_s16, %s15_s16   ;;  %s1242_s15 = sphi %s1278_s15, %s1555_s15   ;;  %s1238_s14 = sphi %s1276_s14, %s1554_s14   ;;  %s1234_s13 = sphi %s1274_s13, %s1553_s13   ;;  %s1230_s12 = sphi %s1272_s12, %s1552_s12   ;;  %s1226_s11 = sphi %s1270_s11, %s1551_s11   ;;  %s1222_s10 = sphi %s1268_s10, %s1550_s10   ;;  %s1218_s9 = sphi %s1266_s9, %s1549_s9  }
   0x6   : > { %s24_s19 = sadd.s32 1, %s1238_s14  ;;  %s27_s20 = sadd.s32 1, %s1242_s15 }
   0x7   : > { %p25_p0 = scmp.ge.s32.totalorder %s24_s19, 2  ;;  %p98_p1 = scmp.ne.s32.totalorder %s1226_s11, %s1222_s10 }
   0x8   : > { %p99_p2 = scmp.eq.s32.totalorder %s852_s17, 3  ;;  %p104_p5 = scmp.ne.s32.totalorder %s1222_s10, %s1218_s9 }
   0x9   : > { %s1557_s19 = smov (%p25_p0, %s24_s19), 0  ;;  %s1559_s20 = smov (!%p25_p0, %s27_s20), %s1242_s15 }
   0xa   : > { %s84_s21 = ssub.s32 %s1238_s14, %s1557_s19  ;;  %p1317_p3 = por %p99_p2, %p98_p1 }
   0xb   : > { %p29_p4 = scmp.ge.s32.totalorder %s1559_s20, 2  ;;  %p105_p6 = scmp.eq.s32.totalorder %s853_s18, 3 }
   0xc   : > { %p856_p7 = scmp.ge.s32.totalorder %s1246_s16, 1  ;;  %p141_p9 = scmp.lt.s32.totalorder %s1246_s16, 5 }
   0xd   : > { %s1561_s20 = smov (%p29_p4, %s1559_s20), 0  ;;  %p1326_p8 = por %p105_p6, %p104_p5 }
   0xe   : > { %s83_s24 = ssub.s32 %s1242_s15, %s1561_s20  ;;  %s88_s25 = sadd.s32 1, %s1226_s11 }
   0xf   : > { %s85_s26 = sor.u32 %s84_s21, %s83_s24  ;;  %p142_p10 = pnand %p856_p7, %p141_p9 }
  0x10   : > { %p86_p11 = scmp.eq.s32.totalorder %s85_s26, 0  ;;  %s860_s28 = sshll.u32 (!%p142_p10), %s1230_s12, 5 }
  0x11   : > { %145 = sbr.rel (%p142_p10) target bundleno = 348 (0x15c), region = 28  ;;  %p175_p12 = scmp.lt.s32.totalorder (!%p142_p10), %s860_s28, 63 }
  0x12   : > { %s1335_s27 = scalar_select %p86_p11, %s1226_s11, %s88_s25  }
  0x13   : > { %s858_s5 = sshll.u32 (!%p142_p10), %s1234_s13, 5  ;;  %s165_s18 = sand.u32 (!%p142_p10), 1, %s1222_s10  }
  0x14   : > { %p169_p13 = scmp.lt.s32.totalorder (!%p142_p10), %s858_s5, 63  ;;  %s857_s21 = sshll.u32 (!%p142_p10), %s165_s18, 9 }
  0x15   : > { %s1432_s24 = scalar_lea.vmem (!%p142_p10), [#allocation2], %s857_s21  ;;  %s1024_s25 = sshll.u32 (!%p142_p10), %s1230_s12, 1 }
  0x16   : > { %s1563_s28 = smov (!%p175_p12, %s860_s28), 63  ;;  %vm406_vm0 = vcmask 130048   ;;  %s1565_s5 = smov (!%p169_p13, %s858_s5), 63 }
  0x17   : > { %s861_s29 = sshll.u32 %s1563_s28, 2  ;;  %s859_s6 = sshll.u32 %s1565_s5, 2 }
  0x18   : > { %s1341_s4 = scalar_lea.vmem %s1545_s1, %s861_s29  ;;  %s1379_s17 = scalar_lea.vmem %s1544_s0, %s859_s6 }
  0x19   : > { %v1052_v0 = vld [vmem:[%s1341_s4 + $0x38] sm:$0xff]  ;;  %v1051_v4 = vld [vmem:[%s1341_s4 + $0x30] sm:$0xff]  ;;  %v1050_v8 = vld [vmem:[%s1341_s4 + $0x28] sm:$0xff]  ;;  %s1061_s26 = sshll.u32 %s1234_s13, 7  ;;  %s761_s3 = sshll.u32 %s1432_s24, 4  ;;  %s762_s3 = int_to_ptr.vmem [resolvable:$true] %s761_s3 }
  0x1a   : > { %v1060_v1 = vld [vmem:[%s1341_s4 + $0x78] sm:$0xff]  ;;  %v477_v2 = vsel %vm406_vm0, %v1052_v0, 0  ;;  %v1059_v5 = vld [vmem:[%s1341_s4 + $0x70] sm:$0xff]  ;;  %v474_v6 = vsel %vm406_vm0, %v1051_v4, 0  ;;  %v1058_v9 = vld [vmem:[%s1341_s4 + $0x68] sm:$0xff]  ;;  %v471_v10 = vsel %vm406_vm0, %v1050_v8, 0  ;;  %s758_s28 = sadd.s32 %s1061_s26, %s1024_s25 }
  0x1b   : > { %v501_v3 = vsel %vm406_vm0, %v1060_v1, 0  ;;  %503 = vmatpush.bf16.xpose.msra.mxu0 %v477_v2  ;;  %1062 = vmatpush.bf16.xpose.msra.mxu2 %v477_v2  ;;  %v498_v7 = vsel %vm406_vm0, %v1059_v5, 0  ;;  %v495_v11 = vsel %vm406_vm0, %v1058_v9, 0  ;;  %v1049_v12 = vld [vmem:[%s1341_s4 + $0x20] sm:$0xff]  ;;  %v1048_v16 = vld [vmem:[%s1341_s4 + $0x18] sm:$0xff]  ;;  %v1047_v20 = vld [vmem:[%s1341_s4 + $0x10] sm:$0xff] }
  0x1c   : > { %592 = vmatpush.bf16.xpose.msra.mxu1 %v501_v3  ;;  %1070 = vmatpush.bf16.xpose.msra.mxu3 %v501_v3  ;;  %v1057_v13 = vld [vmem:[%s1341_s4 + $0x60] sm:$0xff]  ;;  %v468_v14 = vsel %vm406_vm0, %v1049_v12, 0  ;;  %v1056_v17 = vld [vmem:[%s1341_s4 + $0x58] sm:$0xff]  ;;  %v465_v18 = vsel %vm406_vm0, %v1048_v16, 0  ;;  %v1055_v21 = vld [vmem:[%s1341_s4 + $0x50] sm:$0xff]  ;;  %v462_v22 = vsel %vm406_vm0, %v1047_v20, 0 }
  0x1d   : > { %v492_v15 = vsel %vm406_vm0, %v1057_v13, 0  ;;  %v489_v19 = vsel %vm406_vm0, %v1056_v17, 0  ;;  %v486_v23 = vsel %vm406_vm0, %v1055_v21, 0  ;;  %v1046_v24 = vld [vmem:[%s1341_s4 + $0x8] sm:$0xff]  ;;  %v1045_v28 = vld [vmem:[%s1341_s4] sm:$0xff]  ;;  %v1031_v36 = vld [vmem:[%s1379_s17 + $0x10] sm:$0xff] }
  0x1e   : > { %v1054_v25 = vld [vmem:[%s1341_s4 + $0x48] sm:$0xff]  ;;  %v459_v26 = vsel %vm406_vm0, %v1046_v24, 0  ;;  %v1053_v29 = vld [vmem:[%s1341_s4 + $0x40] sm:$0xff]  ;;  %v456_v30 = vsel %vm406_vm0, %v1045_v28, 0  ;;  %v1039_v37 = vld [vmem:[%s1379_s17 + $0x50] sm:$0xff]  ;;  %s1026_s29 = sshll.u32 %s758_s28, 3 }
  0x1f   : > { %v483_v27 = vsel %vm406_vm0, %v1054_v25, 0  ;;  %v480_v31 = vsel %vm406_vm0, %v1053_v29, 0  ;;  %v1029_v32 = vld [vmem:[%s1379_s17] sm:$0xff]  ;;  %v1030_v34 = vld [vmem:[%s1379_s17 + $0x8] sm:$0xff]  ;;  %v1032_v38 = vld [vmem:[%s1379_s17 + $0x18] sm:$0xff]  ;;  %s760_s30 = scalar_lea.hbm %s1546_s2, %s1026_s29  ;;  %s746_s5 = scalar_lea.sflag [#allocation3], %s165_s18 }
  0x20   : > { %v1037_v33 = vld [vmem:[%s1379_s17 + $0x40] sm:$0xff]  ;;  %v1038_v35 = vld [vmem:[%s1379_s17 + $0x48] sm:$0xff]  ;;  %v1040_v39 = vld [vmem:[%s1379_s17 + $0x58] sm:$0xff]  ;;  %s763_s4 = sshll.u32 %s760_s30, 4  ;;  %s1172_s21 = scalar_lea.hbm %s1546_s2, 2048  ;;  %s764_s4 = int_to_ptr.hbm [resolvable:$true] %s763_s4 }
  0x21   : > { %v1033_v40 = vld [vmem:[%s1379_s17 + $0x20] sm:$0xff]  ;;  %v1034_v42 = vld [vmem:[%s1379_s17 + $0x28] sm:$0xff]  ;;  %v1035_v44 = vld [vmem:[%s1379_s17 + $0x30] sm:$0xff]  ;;  %s1166_s6 = sshra.s32 %s764_s4, 4  ;;  %s1167_s6 = int_to_ptr.hbm [resolvable:$true] %s1166_s6 }
  0x22   : > { %v1041_v41 = vld [vmem:[%s1379_s17 + $0x60] sm:$0xff]  ;;  %v1042_v43 = vld [vmem:[%s1379_s17 + $0x68] sm:$0xff]  ;;  %v1043_v45 = vld [vmem:[%s1379_s17 + $0x70] sm:$0xff]  ;;  %s1168_s7 = scalar_lea.hbm %s1167_s6, 512  ;;  %p1173_p4 = scmp.lt.s32.totalorder %s1167_s6, %s1546_s2 }
  0x23   : > { %504 = vmatpush.bf16.xpose.msra.mxu0 %v474_v6  ;;  %1063 = vmatpush.bf16.xpose.msra.mxu2 %v474_v6  ;;  %v1036_v46 = vld [vmem:[%s1379_s17 + $0x38] sm:$0xff]  ;;  %p1169_p0 = scmp.ne.s32.totalorder %s1167_s6, %s1168_s7  ;;  %p1174_p5 = scmp.lt.s32.totalorder %s1172_s21, %s1168_s7 }
  0x24   : > { %593 = vmatpush.bf16.xpose.msra.mxu1 %v498_v7  ;;  %1071 = vmatpush.bf16.xpose.msra.mxu3 %v498_v7  ;;  %v1044_v47 = vld [vmem:[%s1379_s17 + $0x78] sm:$0xff] }
  0x25   : > { %p1170_p1 = pnand %p1169_p0, %p1317_p3  ;;  %p1175_p6 = por %p1174_p5, %p1173_p4 }
  0x27   : > { %p1171_p2 = pneg %p1170_p1 }
  0x29   : > { %p1176_p7 = pnand %p1175_p6, %p1171_p2 }
  0x2b   : > { %505 = vmatpush.bf16.xpose.msra.mxu0 %v471_v10  ;;  %1064 = vmatpush.bf16.xpose.msra.mxu2 %v471_v10 }
  0x2c   : > { %594 = vmatpush.bf16.xpose.msra.mxu1 %v495_v11  ;;  %1072 = vmatpush.bf16.xpose.msra.mxu3 %v495_v11 }
  0x33   : > { %506 = vmatpush.bf16.xpose.msra.mxu0 %v468_v14  ;;  %1065 = vmatpush.bf16.xpose.msra.mxu2 %v468_v14 }
  0x34   : > { %595 = vmatpush.bf16.xpose.msra.mxu1 %v492_v15  ;;  %1073 = vmatpush.bf16.xpose.msra.mxu3 %v492_v15 }
  0x3b   : > { %507 = vmatpush.bf16.xpose.msra.mxu0 %v465_v18  ;;  %1066 = vmatpush.bf16.xpose.msra.mxu2 %v465_v18 }
  0x3c   : > { %596 = vmatpush.bf16.xpose.msra.mxu1 %v489_v19  ;;  %1074 = vmatpush.bf16.xpose.msra.mxu3 %v489_v19 }
  0x43   : > { %508 = vmatpush.bf16.xpose.msra.mxu0 %v462_v22  ;;  %1067 = vmatpush.bf16.xpose.msra.mxu2 %v462_v22 }
  0x44   : > { %597 = vmatpush.bf16.xpose.msra.mxu1 %v486_v23  ;;  %1075 = vmatpush.bf16.xpose.msra.mxu3 %v486_v23 }
  0x4b   : > { %509 = vmatpush.bf16.xpose.msra.mxu0 %v459_v26  ;;  %1068 = vmatpush.bf16.xpose.msra.mxu2 %v459_v26 }
  0x4c   : > { %598 = vmatpush.bf16.xpose.msra.mxu1 %v483_v27  ;;  %1076 = vmatpush.bf16.xpose.msra.mxu3 %v483_v27 }
  0x53   : > { %510 = vmatpush.bf16.xpose.msra.mxu0 %v456_v30  ;;  %1069 = vmatpush.bf16.xpose.msra.mxu2 %v456_v30 }
  0x54   : > { %599 = vmatpush.bf16.xpose.msra.mxu1 %v480_v31  ;;  %1077 = vmatpush.bf16.xpose.msra.mxu3 %v480_v31 }
  0x5a   : > { %990 = vmatmul.msk.bf16.vlgmr.msra.gmra.mxu0 %vm406_vm0, %v1029_v32  ;;  %998 = vmatmul.msk.bf16.vlgmr.msra.gmra.mxu2 %vm406_vm0, %v1037_v33 }
  0x5b   : > { %1006 = vmatmul.msk.bf16.vlgmr.msra.gmra.mxu1 %vm406_vm0, %v1029_v32  ;;  %1014 = vmatmul.msk.bf16.vlgmr.msra.gmra.mxu3 %vm406_vm0, %v1037_v33 }
  0x6a   : > { %991 = vmatmul.msk.bf16.gmra.mxu0 %vm406_vm0, %v1030_v34  ;;  %999 = vmatmul.msk.bf16.gmra.mxu2 %vm406_vm0, %v1038_v35 }
  0x6b   : > { %1007 = vmatmul.msk.bf16.gmra.mxu1 %vm406_vm0, %v1030_v34  ;;  %1015 = vmatmul.msk.bf16.gmra.mxu3 %vm406_vm0, %v1038_v35 }
  0x7a   : > { %992 = vmatmul.msk.bf16.gmra.mxu0 %vm406_vm0, %v1031_v36  ;;  %1000 = vmatmul.msk.bf16.gmra.mxu2 %vm406_vm0, %v1039_v37 }
  0x7b   : > { %1008 = vmatmul.msk.bf16.gmra.mxu1 %vm406_vm0, %v1031_v36  ;;  %1016 = vmatmul.msk.bf16.gmra.mxu3 %vm406_vm0, %v1039_v37 }
  0x8a   : > { %993 = vmatmul.msk.bf16.gmra.mxu0 %vm406_vm0, %v1032_v38  ;;  %1001 = vmatmul.msk.bf16.gmra.mxu2 %vm406_vm0, %v1040_v39 }
  0x8b   : > { %1009 = vmatmul.msk.bf16.gmra.mxu1 %vm406_vm0, %v1032_v38  ;;  %1017 = vmatmul.msk.bf16.gmra.mxu3 %vm406_vm0, %v1040_v39 }
  0x9a   : > { %994 = vmatmul.msk.bf16.gmra.mxu0 %vm406_vm0, %v1033_v40  ;;  %1002 = vmatmul.msk.bf16.gmra.mxu2 %vm406_vm0, %v1041_v41 }
  0x9b   : > { %1010 = vmatmul.msk.bf16.gmra.mxu1 %vm406_vm0, %v1033_v40  ;;  %1018 = vmatmul.msk.bf16.gmra.mxu3 %vm406_vm0, %v1041_v41 }
  0xaa   : > { %995 = vmatmul.msk.bf16.gmra.mxu0 %vm406_vm0, %v1034_v42  ;;  %1003 = vmatmul.msk.bf16.gmra.mxu2 %vm406_vm0, %v1042_v43 }
  0xab   : > { %1011 = vmatmul.msk.bf16.gmra.mxu1 %vm406_vm0, %v1034_v42  ;;  %1019 = vmatmul.msk.bf16.gmra.mxu3 %vm406_vm0, %v1042_v43 }
  0xba   : > { %996 = vmatmul.msk.bf16.gmra.mxu0 %vm406_vm0, %v1035_v44  ;;  %1004 = vmatmul.msk.bf16.gmra.mxu2 %vm406_vm0, %v1043_v45 }
  0xbb   : > { %1012 = vmatmul.msk.bf16.gmra.mxu1 %vm406_vm0, %v1035_v44  ;;  %1020 = vmatmul.msk.bf16.gmra.mxu3 %vm406_vm0, %v1043_v45 }
  0xca   : > { %997 = vmatmul.msk.bf16.gmra.mxu0 %vm406_vm0, %v1036_v46  ;;  %1005 = vmatmul.msk.bf16.gmra.mxu2 %vm406_vm0, %v1044_v47 }
  0xcb   : > { %1013 = vmatmul.msk.bf16.gmra.mxu1 %vm406_vm0, %v1036_v46  ;;  %1021 = vmatmul.msk.bf16.gmra.mxu3 %vm406_vm0, %v1044_v47 }
  0xd7   : > { %v512_v48 = vpop.f32.mrf.mxu0 }
  0xd8   : > { %681 = vst [vmem:[%s1432_s24] sm:$0xff] %v512_v48  ;;  %v601_v49 = vpop.f32.mrf.mxu1 }
  0xd9   : > { %682 = vst [vmem:[%s1432_s24 + $0x8] sm:$0xff] %v601_v49 }
  0xdd   : > { %v552_v50 = vpop.f32.mrf.mxu2 }
  0xde   : > { %713 = vst [vmem:[%s1432_s24 + $0x100] sm:$0xff] %v552_v50  ;;  %v641_v51 = vpop.f32.mrf.mxu3 }
  0xdf   : > { %714 = vst [vmem:[%s1432_s24 + $0x108] sm:$0xff] %v641_v51  ;;  %v514_v52 = vpop.f32.mrf.mxu0 }
  0xe0   : > { %683 = vst [vmem:[%s1432_s24 + $0x10] sm:$0xff] %v514_v52  ;;  %v603_v53 = vpop.f32.mrf.mxu1 }
  0xe1   : > { %684 = vst [vmem:[%s1432_s24 + $0x18] sm:$0xff] %v603_v53 }
  0xe5   : > { %v554_v54 = vpop.f32.mrf.mxu2 }
  0xe6   : > { %715 = vst [vmem:[%s1432_s24 + $0x110] sm:$0xff] %v554_v54  ;;  %v643_v55 = vpop.f32.mrf.mxu3 }
  0xe7   : > { %716 = vst [vmem:[%s1432_s24 + $0x118] sm:$0xff] %v643_v55  ;;  %v517_v56 = vpop.f32.mrf.mxu0 }
  0xe8   : > { %685 = vst [vmem:[%s1432_s24 + $0x20] sm:$0xff] %v517_v56  ;;  %v606_v57 = vpop.f32.mrf.mxu1 }
  0xe9   : > { %686 = vst [vmem:[%s1432_s24 + $0x28] sm:$0xff] %v606_v57 }
  0xed   : > { %v557_v58 = vpop.f32.mrf.mxu2 }
  0xee   : > { %717 = vst [vmem:[%s1432_s24 + $0x120] sm:$0xff] %v557_v58  ;;  %v646_v59 = vpop.f32.mrf.mxu3 }
  0xef   : > { %718 = vst [vmem:[%s1432_s24 + $0x128] sm:$0xff] %v646_v59  ;;  %v519_v60 = vpop.f32.mrf.mxu0 }
  0xf0   : > { %687 = vst [vmem:[%s1432_s24 + $0x30] sm:$0xff] %v519_v60  ;;  %v608_v61 = vpop.f32.mrf.mxu1 }
  0xf1   : > { %688 = vst [vmem:[%s1432_s24 + $0x38] sm:$0xff] %v608_v61 }
  0xf5   : > { %v559_v62 = vpop.f32.mrf.mxu2 }
  0xf6   : > { %719 = vst [vmem:[%s1432_s24 + $0x130] sm:$0xff] %v559_v62  ;;  %v648_v63 = vpop.f32.mrf.mxu3 }
  0xf7   : > { %720 = vst [vmem:[%s1432_s24 + $0x138] sm:$0xff] %v648_v63  ;;  %v522_v0 = vpop.f32.mrf.mxu0 }
  0xf8   : > { %689 = vst [vmem:[%s1432_s24 + $0x40] sm:$0xff] %v522_v0  ;;  %v611_v1 = vpop.f32.mrf.mxu1 }
  0xf9   : > { %690 = vst [vmem:[%s1432_s24 + $0x48] sm:$0xff] %v611_v1 }
  0xfd   : > { %v562_v2 = vpop.f32.mrf.mxu2 }
  0xfe   : > { %721 = vst [vmem:[%s1432_s24 + $0x140] sm:$0xff] %v562_v2  ;;  %v651_v3 = vpop.f32.mrf.mxu3 }
  0xff   : > { %722 = vst [vmem:[%s1432_s24 + $0x148] sm:$0xff] %v651_v3  ;;  %v524_v4 = vpop.f32.mrf.mxu0 }
 0x100   : > { %691 = vst [vmem:[%s1432_s24 + $0x50] sm:$0xff] %v524_v4  ;;  %v613_v5 = vpop.f32.mrf.mxu1 }
 0x101   : > { %692 = vst [vmem:[%s1432_s24 + $0x58] sm:$0xff] %v613_v5 }
 0x105   : > { %v564_v6 = vpop.f32.mrf.mxu2 }
 0x106   : > { %723 = vst [vmem:[%s1432_s24 + $0x150] sm:$0xff] %v564_v6  ;;  %v653_v7 = vpop.f32.mrf.mxu3 }
 0x107   : > { %724 = vst [vmem:[%s1432_s24 + $0x158] sm:$0xff] %v653_v7  ;;  %v527_v8 = vpop.f32.mrf.mxu0 }
 0x108   : > { %693 = vst [vmem:[%s1432_s24 + $0x60] sm:$0xff] %v527_v8  ;;  %v616_v9 = vpop.f32.mrf.mxu1 }
 0x109   : > { %694 = vst [vmem:[%s1432_s24 + $0x68] sm:$0xff] %v616_v9 }
 0x10d   : > { %v567_v10 = vpop.f32.mrf.mxu2 }
 0x10e   : > { %725 = vst [vmem:[%s1432_s24 + $0x160] sm:$0xff] %v567_v10  ;;  %v656_v11 = vpop.f32.mrf.mxu3 }
 0x10f   : > { %726 = vst [vmem:[%s1432_s24 + $0x168] sm:$0xff] %v656_v11  ;;  %v529_v12 = vpop.f32.mrf.mxu0 }
 0x110   : > { %695 = vst [vmem:[%s1432_s24 + $0x70] sm:$0xff] %v529_v12  ;;  %v618_v13 = vpop.f32.mrf.mxu1 }
 0x111   : > { %696 = vst [vmem:[%s1432_s24 + $0x78] sm:$0xff] %v618_v13 }
 0x115   : > { %v569_v14 = vpop.f32.mrf.mxu2 }
 0x116   : > { %727 = vst [vmem:[%s1432_s24 + $0x170] sm:$0xff] %v569_v14  ;;  %v658_v15 = vpop.f32.mrf.mxu3 }
 0x117   : > { %728 = vst [vmem:[%s1432_s24 + $0x178] sm:$0xff] %v658_v15  ;;  %v532_v16 = vpop.f32.mrf.mxu0 }
 0x118   : > { %697 = vst [vmem:[%s1432_s24 + $0x80] sm:$0xff] %v532_v16  ;;  %v621_v17 = vpop.f32.mrf.mxu1 }
 0x119   : > { %698 = vst [vmem:[%s1432_s24 + $0x88] sm:$0xff] %v621_v17 }
 0x11d   : > { %v572_v18 = vpop.f32.mrf.mxu2 }
 0x11e   : > { %729 = vst [vmem:[%s1432_s24 + $0x180] sm:$0xff] %v572_v18  ;;  %v661_v19 = vpop.f32.mrf.mxu3 }
 0x11f   : > { %730 = vst [vmem:[%s1432_s24 + $0x188] sm:$0xff] %v661_v19  ;;  %v534_v20 = vpop.f32.mrf.mxu0 }
 0x120   : > { %699 = vst [vmem:[%s1432_s24 + $0x90] sm:$0xff] %v534_v20  ;;  %v623_v21 = vpop.f32.mrf.mxu1 }
 0x121   : > { %700 = vst [vmem:[%s1432_s24 + $0x98] sm:$0xff] %v623_v21 }
 0x125   : > { %v574_v22 = vpop.f32.mrf.mxu2 }
 0x126   : > { %731 = vst [vmem:[%s1432_s24 + $0x190] sm:$0xff] %v574_v22  ;;  %v663_v23 = vpop.f32.mrf.mxu3 }
 0x127   : > { %732 = vst [vmem:[%s1432_s24 + $0x198] sm:$0xff] %v663_v23  ;;  %v537_v24 = vpop.f32.mrf.mxu0 }
 0x128   : > { %701 = vst [vmem:[%s1432_s24 + $0xa0] sm:$0xff] %v537_v24  ;;  %v626_v25 = vpop.f32.mrf.mxu1 }
 0x129   : > { %702 = vst [vmem:[%s1432_s24 + $0xa8] sm:$0xff] %v626_v25 }
 0x12d   : > { %v577_v26 = vpop.f32.mrf.mxu2 }
 0x12e   : > { %733 = vst [vmem:[%s1432_s24 + $0x1a0] sm:$0xff] %v577_v26  ;;  %v666_v27 = vpop.f32.mrf.mxu3 }
 0x12f   : > { %734 = vst [vmem:[%s1432_s24 + $0x1a8] sm:$0xff] %v666_v27  ;;  %v539_v28 = vpop.f32.mrf.mxu0 }
 0x130   : > { %703 = vst [vmem:[%s1432_s24 + $0xb0] sm:$0xff] %v539_v28  ;;  %v628_v29 = vpop.f32.mrf.mxu1 }
 0x131   : > { %704 = vst [vmem:[%s1432_s24 + $0xb8] sm:$0xff] %v628_v29 }
 0x135   : > { %v579_v30 = vpop.f32.mrf.mxu2 }
 0x136   : > { %735 = vst [vmem:[%s1432_s24 + $0x1b0] sm:$0xff] %v579_v30  ;;  %v668_v31 = vpop.f32.mrf.mxu3 }
 0x137   : > { %736 = vst [vmem:[%s1432_s24 + $0x1b8] sm:$0xff] %v668_v31  ;;  %v542_v32 = vpop.f32.mrf.mxu0 }
 0x138   : > { %705 = vst [vmem:[%s1432_s24 + $0xc0] sm:$0xff] %v542_v32  ;;  %v631_v33 = vpop.f32.mrf.mxu1 }
 0x139   : > { %706 = vst [vmem:[%s1432_s24 + $0xc8] sm:$0xff] %v631_v33 }
 0x13d   : > { %v582_v34 = vpop.f32.mrf.mxu2 }
 0x13e   : > { %737 = vst [vmem:[%s1432_s24 + $0x1c0] sm:$0xff] %v582_v34  ;;  %v671_v35 = vpop.f32.mrf.mxu3 }
 0x13f   : > { %738 = vst [vmem:[%s1432_s24 + $0x1c8] sm:$0xff] %v671_v35  ;;  %v544_v36 = vpop.f32.mrf.mxu0 }
 0x140   : > { %707 = vst [vmem:[%s1432_s24 + $0xd0] sm:$0xff] %v544_v36  ;;  %v633_v37 = vpop.f32.mrf.mxu1 }
 0x141   : > { %708 = vst [vmem:[%s1432_s24 + $0xd8] sm:$0xff] %v633_v37 }
 0x145   : > { %v584_v38 = vpop.f32.mrf.mxu2 }
 0x146   : > { %739 = vst [vmem:[%s1432_s24 + $0x1d0] sm:$0xff] %v584_v38  ;;  %v673_v39 = vpop.f32.mrf.mxu3 }
 0x147   : > { %740 = vst [vmem:[%s1432_s24 + $0x1d8] sm:$0xff] %v673_v39  ;;  %v547_v40 = vpop.f32.mrf.mxu0 }
 0x148   : > { %709 = vst [vmem:[%s1432_s24 + $0xe0] sm:$0xff] %v547_v40  ;;  %v636_v41 = vpop.f32.mrf.mxu1 }
 0x149   : > { %710 = vst [vmem:[%s1432_s24 + $0xe8] sm:$0xff] %v636_v41 }
 0x14d   : > { %v587_v42 = vpop.f32.mrf.mxu2 }
 0x14e   : > { %741 = vst [vmem:[%s1432_s24 + $0x1e0] sm:$0xff] %v587_v42  ;;  %v676_v43 = vpop.f32.mrf.mxu3 }
 0x14f   : > { %742 = vst [vmem:[%s1432_s24 + $0x1e8] sm:$0xff] %v676_v43  ;;  %v549_v44 = vpop.f32.mrf.mxu0 }
 0x150   : > { %711 = vst [vmem:[%s1432_s24 + $0xf0] sm:$0xff] %v549_v44  ;;  %v638_v45 = vpop.f32.mrf.mxu1 }
 0x151   : > { %712 = vst [vmem:[%s1432_s24 + $0xf8] sm:$0xff] %v638_v45 }
 0x155   : > { %v589_v46 = vpop.f32.mrf.mxu2 }
 0x156   : > { %743 = vst [vmem:[%s1432_s24 + $0x1f0] sm:$0xff] %v589_v46  ;;  %v678_v47 = vpop.f32.mrf.mxu3 }
 0x157   : > { %744 = vst [vmem:[%s1432_s24 + $0x1f8] sm:$0xff] %v678_v47 }
 0x158   : > { %1179 = shalt.err (!%p1176_p7)
}
 0x159   : > { %s1248_s18 = smov 256   ;;  %s1249_s24 = smov 512  }
 0x15a   : > { %s1250_s28 = smov 16  }
 0x15b   : > { %1078 = dma.vmem_to_hbm [thread:$0]  (%p1317_p3), %s762_s3, 8192, %s764_s4, %s746_s5, %s1248_s18, %s1249_s24, %s1250_s28  }
 0x15c PF: > { %p1084_p9 = scmp.ge.s32.totalorder %s1246_s16, 2  ;;  %s778_s29 = sand.u32 1, %s1218_s9  }
 0x15d   : > { %s779_s12 = scalar_lea.sflag [#allocation3], %s778_s29 }
 0x15e   : > { %p1081_p10 = pnand %p1084_p9, %p1326_p8 }
 0x160   : > { %p1082_p11 = pneg %p1081_p10 }
 0x162   : > { %1213 = dma.done.wait (%p1082_p11), %s779_s12, 8192  }
 0x163   : > { %1215 = vsyncadd (%p1082_p11), %s779_s12, 4294959104  ;;  %s15_s16 = sadd.s32 1, %s1246_s16   ;;  %s1549_s9 = smov %s1222_s10 }
 0x164   : > { %p12_p12 = scmp.ge.s32.totalorder %s15_s16, 6   ;;  %s1550_s10 = smov %s1226_s11 }
 0x165   : > { %s1551_s11 = smov %s1335_s27  ;;  %s1552_s12 = smov %s1238_s14 }
 0x166   : > { %s1553_s13 = smov %s1242_s15  ;;  %s1554_s14 = smov %s1557_s19 }
 0x167   : > { %s1555_s15 = smov %s1561_s20  ;;  %14 = sbr.rel (!%p12_p12) target bundleno = 5 (0x5), region = 66 }
 0x16c   :  { %785 = vsyncpa [#allocation3], 1 }
 0x16d   :  { %787 = vsyncpa [#allocation3 + $0x1], 1 }

</bundles_post_ra>
